<compile_context>
chip_gen: v5e
topology: v5e:2x2
jax: 0.10.0
libtpu: 0.0.40
codegen_flags: <defaults>
</compile_context>

<pallas_src>
import functools

import jax
import jax.numpy as jnp
from jax.experimental import pallas as pl
from jax.experimental.pallas import tpu as pltpu


def _discriminator_kernel(x_ref, yemb_ref,
                          w1i_ref, w1l_ref, b1_ref,
                          w2_ref, b2_ref,
                          w3_ref, b3_ref,
                          w4_ref, b4_ref,
                          out_ref):
    # In-kernel bf16 cast of the streamed activations (no wrapper HBM pass).
    x = x_ref[...].astype(jnp.bfloat16)          # (TB, img_dim)
    y = yemb_ref[...].astype(jnp.bfloat16)       # (TB, n_labels)

    # ---- Layer 1: split contraction (image chunk + label chunk), f32 acc.
    h = jnp.dot(x, w1i_ref[...], preferred_element_type=jnp.float32)
    h = h + jnp.dot(y, w1l_ref[...], preferred_element_type=jnp.float32)
    h = jnp.maximum(h + b1_ref[...], 0.0)        # ReLU in f32

    # ---- Layer 2 (Dropout(0.4) -> identity in eval mode)
    h = jnp.dot(h.astype(jnp.bfloat16), w2_ref[...],
                preferred_element_type=jnp.float32)
    h = jnp.maximum(h + b2_ref[...], 0.0)

    # ---- Layer 3 (Dropout(0.4) -> identity in eval mode)
    h = jnp.dot(h.astype(jnp.bfloat16), w3_ref[...],
                preferred_element_type=jnp.float32)
    h = jnp.maximum(h + b3_ref[...], 0.0)

    # ---- Layer 4: (hidden -> 1) as w4 @ h^T on the MXU -> lane-dense row.
    # w4_ref is the projection row replicated over 8 sublanes (aligned shapes);
    # only row 0 of the result is used.
    out8 = jax.lax.dot_general(
        w4_ref[...], h.astype(jnp.bfloat16),
        dimension_numbers=(((1,), (1,)), ((), ())),
        preferred_element_type=jnp.float32)       # (8, TB)
    out_row = out8[0:1, :] + b4_ref[...]          # (1, TB)
    out_ref[...] = out_row[None].astype(out_ref.dtype)   # (1, 1, TB), dense store


def _round_up(a, m):
    return ((a + m - 1) // m) * m


@functools.partial(jax.jit, static_argnames=("tile_b",))
def discriminator_forward(x_flat, y_emb, params, *, tile_b=512):
    """x_flat: (B, img_dim) f32; y_emb: (B, n_labels) f32; params: init_params()."""
    assert tile_b % 8 == 0, "tile_b must be a multiple of 8"
    B, img_dim = x_flat.shape
    n_labels = y_emb.shape[1]
    hidden = params["w2"].shape[0]

    # Effective batch tile: never larger than the (8-aligned) batch; if the
    # whole batch fits in one big tile, split it so v7x's two TensorCores both
    # get work on the "parallel" grid axis (no-op on v5e/v6e).
    b8 = _round_up(B, 8)
    tile = min(tile_b, b8)
    if tile == b8 and tile >= 256 and tile % 16 == 0:
        tile //= 2

    b_pad = _round_up(B, tile)
    n_tiles = b_pad // tile
    if b_pad != B:
        pad = ((0, b_pad - B), (0, 0))
        x_flat = jnp.pad(x_flat, pad)   # zero rows: flow through ReLU, sliced off below
        y_emb = jnp.pad(y_emb, pad)

    resident = lambda shape: pl.BlockSpec(shape, lambda i: (0, 0))

    # Honest VMEM budget: weights (~1.3 MiB bf16, double-buffered), f32 x/y
    # tiles, f32 hidden temporaries. 16 MiB covers tile_b <= 512 comfortably.
    vmem_limit = (16 if tile <= 512 else 32) * 1024 * 1024

    out = pl.pallas_call(
        _discriminator_kernel,
        out_shape=jax.ShapeDtypeStruct((n_tiles, 1, tile), jnp.float32),
        grid=(n_tiles,),
        in_specs=[
            pl.BlockSpec((tile, img_dim), lambda i: (i, 0)),    # x tile (f32)
            pl.BlockSpec((tile, n_labels), lambda i: (i, 0)),   # label-emb tile (f32)
            resident((img_dim, hidden)),                        # w1_img (bf16)
            resident((n_labels, hidden)),                       # w1_lbl (bf16)
            resident((1, hidden)),                              # b1 (f32)
            resident((hidden, hidden)),                         # w2 (bf16)
            resident((1, hidden)),                              # b2
            resident((hidden, hidden)),                         # w3 (bf16)
            resident((1, hidden)),                              # b3
            resident((8, hidden)),                              # w4 rows (bf16)
            resident((1, 1)),                                   # b4
        ],
        out_specs=pl.BlockSpec((1, 1, tile), lambda i: (i, 0, 0)),
        compiler_params=pltpu.CompilerParams(
            dimension_semantics=("parallel",),
            vmem_limit_bytes=vmem_limit,
        ),
    )(x_flat, y_emb,
      params["w1_img"], params["w1_lbl"], params["b1"],
      params["w2"], params["b2"],
      params["w3"], params["b3"],
      params["w4_rows"], params["b4"])

    return out.reshape(b_pad, 1)[:B]


def init_params(key, img_dim, n_labels, hidden=512):
    """nn.Linear-style init (uniform +-1/sqrt(fan_in)); weights stored transposed
    (fan_in, fan_out) so the kernel computes x @ W + b. Matmul weights in bf16,
    biases in f32."""
    def linear(key, fan_in, fan_out):
        kw, kb = jax.random.split(key)
        bound = 1.0 / jnp.sqrt(fan_in)
        w = jax.random.uniform(kw, (fan_in, fan_out), jnp.float32, -bound, bound)
        b = jax.random.uniform(kb, (1, fan_out), jnp.float32, -bound, bound)
        return w, b

    in_dim = img_dim + n_labels
    k1, k2, k3, k4 = jax.random.split(key, 4)
    w1, b1 = linear(k1, in_dim, hidden)
    w2, b2 = linear(k2, hidden, hidden)
    w3, b3 = linear(k3, hidden, hidden)
    w4, b4 = linear(k4, hidden, 1)
    return {
        "w1_img": w1[:img_dim].astype(jnp.bfloat16),
        "w1_lbl": w1[img_dim:].astype(jnp.bfloat16),
        "b1": b1,
        "w2": w2.astype(jnp.bfloat16), "b2": b2,
        "w3": w3.astype(jnp.bfloat16), "b3": b3,
        # Final (hidden -> 1) projection row replicated to 8 sublanes so the
        # last-layer matmul uses fully aligned shapes; row 0 carries the result.
        "w4_rows": jnp.tile(w4.T, (8, 1)).astype(jnp.bfloat16),
        "b4": b4,
    }


def reference_forward_bf16(x_flat, y_emb, params):
    """Same math as the kernel (bf16 MXU operands, f32 accumulation)."""
    h = jnp.dot(x_flat.astype(jnp.bfloat16), params["w1_img"],
                preferred_element_type=jnp.float32)
    h = h + jnp.dot(y_emb.astype(jnp.bfloat16), params["w1_lbl"],
                    preferred_element_type=jnp.float32)
    h = jnp.maximum(h + params["b1"], 0.0)
    h = jnp.dot(h.astype(jnp.bfloat16), params["w2"], preferred_element_type=jnp.float32)
    h = jnp.maximum(h + params["b2"], 0.0)
    h = jnp.dot(h.astype(jnp.bfloat16), params["w3"], preferred_element_type=jnp.float32)
    h = jnp.maximum(h + params["b3"], 0.0)
    out = jax.lax.dot_general(params["w4_rows"][0:1], h.astype(jnp.bfloat16),
                              dimension_numbers=(((1,), (1,)), ((), ())),
                              preferred_element_type=jnp.float32)   # (1, B)
    return out.T + params["b4"]


def reference_forward_f32(x_flat, y_emb, params):
    """Full-precision reference (PyTorch-equivalent eval-mode forward)."""
    w1 = jnp.concatenate([params["w1_img"].astype(jnp.float32),
                          params["w1_lbl"].astype(jnp.float32)], axis=0)
    inp = jnp.concatenate([x_flat, y_emb], axis=-1)
    h = jnp.maximum(inp @ w1 + params["b1"], 0.0)
    h = jnp.maximum(h @ params["w2"].astype(jnp.float32) + params["b2"], 0.0)
    h = jnp.maximum(h @ params["w3"].astype(jnp.float32) + params["b3"], 0.0)
    return h @ params["w4_rows"][0:1].astype(jnp.float32).T + params["b4"]


if __name__ == "__main__":
    # Small, deterministic problem: conditional discriminator on 1x16x16 images
    # with 8 classes (hidden width 512 as in the PyTorch module).
    B = 2
    img_shape = (1, 16, 16)              # (C, H, W)
    n_labels = 8
    img_dim = int(img_shape[0] * img_shape[1] * img_shape[2])

    key = jax.random.PRNGKey(0)
    kx, ky, kemb, kparams = jax.random.split(key, 4)

    x = jax.random.normal(kx, (B,) + img_shape, jnp.float32)        # NCHW images
    y = jax.random.randint(ky, (B,), 0, n_labels)                   # integer labels
    emb_table = jax.random.normal(kemb, (n_labels, n_labels), jnp.float32)

    params = init_params(kparams, img_dim, n_labels)

    # Glue in plain JAX: flatten NCHW image; embedding lookup (gather).
    x_flat = x.reshape(B, -1)
    y_emb = emb_table[y]                                            # (B, n_labels)

    out = jax.block_until_ready(discriminator_forward(x_flat, y_emb, params))
    assert out.shape == (B, 1)

    ref_bf16 = reference_forward_bf16(x_flat, y_emb, params)
    assert jnp.allclose(out, ref_bf16, atol=1e-3, rtol=1e-3), \
        "kernel mismatch vs bf16-matched reference"

    ref_f32 = reference_forward_f32(x_flat, y_emb, params)
    assert jnp.allclose(out, ref_f32, atol=5e-2, rtol=5e-2), \
        "kernel mismatch vs f32 reference (beyond bf16 tolerance)"

    # Multi-tile path (grid > 1, batch padding, lane-dense output re-layout).
    B2 = 48
    kx2, ky2 = jax.random.split(jax.random.PRNGKey(1))
    x2 = jax.random.normal(kx2, (B2, img_dim), jnp.float32)
    y2 = jax.random.randint(ky2, (B2,), 0, n_labels)
    out2 = jax.block_until_ready(
        discriminator_forward(x2, emb_table[y2], params, tile_b=16))
    ref2 = reference_forward_bf16(x2, emb_table[y2], params)
    assert out2.shape == (B2, 1)
    assert jnp.allclose(out2, ref2, atol=1e-3, rtol=1e-3), \
        "multi-tile kernel mismatch vs bf16-matched reference"

    print("KERNEL_OK")
</pallas_src>

<mosaic_0001>
module attributes {stable_mosaic.version = 11 : i64} {
  func.func @_discriminator_kernel(%arg0: i32, %arg1: memref<8x256xf32, #tpu.memory_space<vmem>>, %arg2: memref<8x8xf32, #tpu.memory_space<vmem>>, %arg3: memref<256x512xbf16, #tpu.memory_space<vmem>>, %arg4: memref<8x512xbf16, #tpu.memory_space<vmem>>, %arg5: memref<1x512xf32, #tpu.memory_space<vmem>>, %arg6: memref<512x512xbf16, #tpu.memory_space<vmem>>, %arg7: memref<1x512xf32, #tpu.memory_space<vmem>>, %arg8: memref<512x512xbf16, #tpu.memory_space<vmem>>, %arg9: memref<1x512xf32, #tpu.memory_space<vmem>>, %arg10: memref<8x512xbf16, #tpu.memory_space<vmem>>, %arg11: memref<1x1xf32, #tpu.memory_space<vmem>>, %arg12: memref<1x1x8xf32, #tpu.memory_space<vmem>>) attributes {dimension_semantics = [#tpu.dimension_semantics<parallel>], iteration_bounds = array<i64: 1>, scalar_prefetch = 0 : i64, scratch_operands = 0 : i64, tpu.core_type = #tpu.core_type<tc>, window_params = [{transform_indices = @transform_0, window_bounds = array<i64: 8, 256>}, {transform_indices = @transform_1, window_bounds = array<i64: 8, 8>}, {pipeline_mode = #tpu.pipeline_mode<synchronous>, transform_indices = @transform_2, window_bounds = array<i64: 256, 512>}, {pipeline_mode = #tpu.pipeline_mode<synchronous>, transform_indices = @transform_3, window_bounds = array<i64: 8, 512>}, {pipeline_mode = #tpu.pipeline_mode<synchronous>, transform_indices = @transform_4, window_bounds = array<i64: 1, 512>}, {pipeline_mode = #tpu.pipeline_mode<synchronous>, transform_indices = @transform_5, window_bounds = array<i64: 512, 512>}, {pipeline_mode = #tpu.pipeline_mode<synchronous>, transform_indices = @transform_6, window_bounds = array<i64: 1, 512>}, {pipeline_mode = #tpu.pipeline_mode<synchronous>, transform_indices = @transform_7, window_bounds = array<i64: 512, 512>}, {pipeline_mode = #tpu.pipeline_mode<synchronous>, transform_indices = @transform_8, window_bounds = array<i64: 1, 512>}, {pipeline_mode = #tpu.pipeline_mode<synchronous>, transform_indices = @transform_9, window_bounds = array<i64: 8, 512>}, {pipeline_mode = #tpu.pipeline_mode<synchronous>, transform_indices = @transform_10, window_bounds = array<i64: 1, 1>}, {transform_indices = @transform_11, window_bounds = array<i64: 1, 1, 8>}]} {
    %c0 = arith.constant 0 : index
    %c0_0 = arith.constant 0 : index
    %0 = vector.load %arg1[%c0, %c0_0] : memref<8x256xf32, #tpu.memory_space<vmem>>, vector<8x256xf32>
    %1 = arith.truncf %0 : vector<8x256xf32> to vector<8x256xbf16>
    %c0_1 = arith.constant 0 : index
    %c0_2 = arith.constant 0 : index
    %2 = vector.load %arg2[%c0_1, %c0_2] : memref<8x8xf32, #tpu.memory_space<vmem>>, vector<8x8xf32>
    %3 = arith.truncf %2 : vector<8x8xf32> to vector<8x8xbf16>
    %c0_3 = arith.constant 0 : index
    %c0_4 = arith.constant 0 : index
    %4 = vector.load %arg3[%c0_3, %c0_4] : memref<256x512xbf16, #tpu.memory_space<vmem>>, vector<256x512xbf16>
    %cst = arith.constant dense<0.000000e+00> : vector<8x512xf32>
    %5 = tpu.matmul %1, %4, %cst {dimension_numbers = #tpu.dot_dimension_numbers<[1], [0], [0], [1], [0, 0, 1, 1], [], []>} : vector<8x256xbf16>, vector<256x512xbf16>, vector<8x512xf32> -> vector<8x512xf32>
    %c0_5 = arith.constant 0 : index
    %c0_6 = arith.constant 0 : index
    %6 = vector.load %arg4[%c0_5, %c0_6] : memref<8x512xbf16, #tpu.memory_space<vmem>>, vector<8x512xbf16>
    %cst_7 = arith.constant dense<0.000000e+00> : vector<8x512xf32>
    %7 = tpu.matmul %3, %6, %cst_7 {dimension_numbers = #tpu.dot_dimension_numbers<[1], [0], [0], [1], [0, 0, 1, 1], [], []>} : vector<8x8xbf16>, vector<8x512xbf16>, vector<8x512xf32> -> vector<8x512xf32>
    %8 = arith.addf %5, %7 : vector<8x512xf32>
    %c0_8 = arith.constant 0 : index
    %c0_9 = arith.constant 0 : index
    %9 = vector.load %arg5[%c0_8, %c0_9] : memref<1x512xf32, #tpu.memory_space<vmem>>, vector<1x512xf32>
    %10 = vector.broadcast %9 : vector<1x512xf32> to vector<8x512xf32>
    %11 = arith.addf %8, %10 : vector<8x512xf32>
    %cst_10 = arith.constant 0.000000e+00 : f32
    %12 = vector.broadcast %cst_10 : f32 to vector<8x512xf32>
    %13 = arith.maximumf %11, %12 : vector<8x512xf32>
    %14 = arith.truncf %13 : vector<8x512xf32> to vector<8x512xbf16>
    %c0_11 = arith.constant 0 : index
    %c0_12 = arith.constant 0 : index
    %15 = vector.load %arg6[%c0_11, %c0_12] : memref<512x512xbf16, #tpu.memory_space<vmem>>, vector<512x512xbf16>
    %cst_13 = arith.constant dense<0.000000e+00> : vector<8x512xf32>
    %16 = tpu.matmul %14, %15, %cst_13 {dimension_numbers = #tpu.dot_dimension_numbers<[1], [0], [0], [1], [0, 0, 1, 1], [], []>} : vector<8x512xbf16>, vector<512x512xbf16>, vector<8x512xf32> -> vector<8x512xf32>
    %c0_14 = arith.constant 0 : index
    %c0_15 = arith.constant 0 : index
    %17 = vector.load %arg7[%c0_14, %c0_15] : memref<1x512xf32, #tpu.memory_space<vmem>>, vector<1x512xf32>
    %18 = vector.broadcast %17 : vector<1x512xf32> to vector<8x512xf32>
    %19 = arith.addf %16, %18 : vector<8x512xf32>
    %cst_16 = arith.constant 0.000000e+00 : f32
    %20 = vector.broadcast %cst_16 : f32 to vector<8x512xf32>
    %21 = arith.maximumf %19, %20 : vector<8x512xf32>
    %22 = arith.truncf %21 : vector<8x512xf32> to vector<8x512xbf16>
    %c0_17 = arith.constant 0 : index
    %c0_18 = arith.constant 0 : index
    %23 = vector.load %arg8[%c0_17, %c0_18] : memref<512x512xbf16, #tpu.memory_space<vmem>>, vector<512x512xbf16>
    %cst_19 = arith.constant dense<0.000000e+00> : vector<8x512xf32>
    %24 = tpu.matmul %22, %23, %cst_19 {dimension_numbers = #tpu.dot_dimension_numbers<[1], [0], [0], [1], [0, 0, 1, 1], [], []>} : vector<8x512xbf16>, vector<512x512xbf16>, vector<8x512xf32> -> vector<8x512xf32>
    %c0_20 = arith.constant 0 : index
    %c0_21 = arith.constant 0 : index
    %25 = vector.load %arg9[%c0_20, %c0_21] : memref<1x512xf32, #tpu.memory_space<vmem>>, vector<1x512xf32>
    %26 = vector.broadcast %25 : vector<1x512xf32> to vector<8x512xf32>
    %27 = arith.addf %24, %26 : vector<8x512xf32>
    %cst_22 = arith.constant 0.000000e+00 : f32
    %28 = vector.broadcast %cst_22 : f32 to vector<8x512xf32>
    %29 = arith.maximumf %27, %28 : vector<8x512xf32>
    %c0_23 = arith.constant 0 : index
    %c0_24 = arith.constant 0 : index
    %30 = vector.load %arg10[%c0_23, %c0_24] : memref<8x512xbf16, #tpu.memory_space<vmem>>, vector<8x512xbf16>
    %31 = arith.truncf %29 : vector<8x512xf32> to vector<8x512xbf16>
    %cst_25 = arith.constant dense<0.000000e+00> : vector<8x8xf32>
    %32 = tpu.matmul %30, %31, %cst_25 {dimension_numbers = #tpu.dot_dimension_numbers<[1], [1], [0], [0], [0, 0, 1, 0], [], []>} : vector<8x512xbf16>, vector<8x512xbf16>, vector<8x8xf32> -> vector<8x8xf32>
    %33 = vector.extract_strided_slice %32 {offsets = [0, 0], sizes = [1, 8], strides = [1, 1]} : vector<8x8xf32> to vector<1x8xf32>
    %c0_26 = arith.constant 0 : index
    %c0_27 = arith.constant 0 : index
    %34 = vector.load %arg11[%c0_26, %c0_27] : memref<1x1xf32, #tpu.memory_space<vmem>>, vector<1x1xf32>
    %35 = vector.broadcast %34 : vector<1x1xf32> to vector<1x8xf32>
    %36 = arith.addf %33, %35 : vector<1x8xf32>
    %37 = vector.shape_cast %36 : vector<1x8xf32> to vector<1x1x8xf32>
    %c0_28 = arith.constant 0 : index
    %c0_29 = arith.constant 0 : index
    %c0_30 = arith.constant 0 : index
    %38 = vector.load %arg12[%c0_28, %c0_29, %c0_30] : memref<1x1x8xf32, #tpu.memory_space<vmem>>, vector<1x1x8xf32>
    tpu.vector_store %arg12[%c0_28, %c0_29, %c0_30], %37 {strides = array<i32>} : memref<1x1x8xf32, #tpu.memory_space<vmem>>, vector<1x1x8xf32>,
    return
  }
  func.func @transform_0(%arg0: i32) -> (i32, i32) {
    %c0_i32 = arith.constant 0 : i32
    %c0_i32_0 = arith.constant 0 : i32
    return %arg0, %c0_i32 : i32, i32
  }
  func.func @transform_1(%arg0: i32) -> (i32, i32) {
    %c0_i32 = arith.constant 0 : i32
    %c0_i32_0 = arith.constant 0 : i32
    return %arg0, %c0_i32 : i32, i32
  }
  func.func @transform_2(%arg0: i32) -> (i32, i32) {
    %c0_i32 = arith.constant 0 : i32
    %c0_i32_0 = arith.constant 0 : i32
    %c0_i32_1 = arith.constant 0 : i32
    return %c0_i32, %c0_i32_0 : i32, i32
  }
  func.func @transform_3(%arg0: i32) -> (i32, i32) {
    %c0_i32 = arith.constant 0 : i32
    %c0_i32_0 = arith.constant 0 : i32
    %c0_i32_1 = arith.constant 0 : i32
    return %c0_i32, %c0_i32_0 : i32, i32
  }
  func.func @transform_4(%arg0: i32) -> (i32, i32) {
    %c0_i32 = arith.constant 0 : i32
    %c0_i32_0 = arith.constant 0 : i32
    %c0_i32_1 = arith.constant 0 : i32
    return %c0_i32, %c0_i32_0 : i32, i32
  }
  func.func @transform_5(%arg0: i32) -> (i32, i32) {
    %c0_i32 = arith.constant 0 : i32
    %c0_i32_0 = arith.constant 0 : i32
    %c0_i32_1 = arith.constant 0 : i32
    return %c0_i32, %c0_i32_0 : i32, i32
  }
  func.func @transform_6(%arg0: i32) -> (i32, i32) {
    %c0_i32 = arith.constant 0 : i32
    %c0_i32_0 = arith.constant 0 : i32
    %c0_i32_1 = arith.constant 0 : i32
    return %c0_i32, %c0_i32_0 : i32, i32
  }
  func.func @transform_7(%arg0: i32) -> (i32, i32) {
    %c0_i32 = arith.constant 0 : i32
    %c0_i32_0 = arith.constant 0 : i32
    %c0_i32_1 = arith.constant 0 : i32
    return %c0_i32, %c0_i32_0 : i32, i32
  }
  func.func @transform_8(%arg0: i32) -> (i32, i32) {
    %c0_i32 = arith.constant 0 : i32
    %c0_i32_0 = arith.constant 0 : i32
    %c0_i32_1 = arith.constant 0 : i32
    return %c0_i32, %c0_i32_0 : i32, i32
  }
  func.func @transform_9(%arg0: i32) -> (i32, i32) {
    %c0_i32 = arith.constant 0 : i32
    %c0_i32_0 = arith.constant 0 : i32
    %c0_i32_1 = arith.constant 0 : i32
    return %c0_i32, %c0_i32_0 : i32, i32
  }
  func.func @transform_10(%arg0: i32) -> (i32, i32) {
    %c0_i32 = arith.constant 0 : i32
    %c0_i32_0 = arith.constant 0 : i32
    %c0_i32_1 = arith.constant 0 : i32
    return %c0_i32, %c0_i32_0 : i32, i32
  }
  func.func @transform_11(%arg0: i32) -> (i32, i32, i32) {
    %c0_i32 = arith.constant 0 : i32
    %c0_i32_0 = arith.constant 0 : i32
    %c0_i32_1 = arith.constant 0 : i32
    return %arg0, %c0_i32, %c0_i32_0 : i32, i32, i32
  }
}

</mosaic_0001>

<bundles_post_ra>
// kernel: discriminator_forward.1
= control target key start
LH: loop header
LB: loop body
LE: loop exit
PB: predicated region body
PF: predicated region fallthrough
CT: control target
= control target key end

     0   :  { %s4711_s0 = inlined_call_operand.vmem [shape: f32[8,256], index: 0, kind: input, shape index: {}]   ;;  %s4712_s1 = inlined_call_operand.vmem [shape: f32[8,8], index: 1, kind: input, shape index: {}]   ;;  %s4713_s2 = inlined_call_operand.hbm [shape: bf16[256,512], index: 2, kind: input, shape index: {}]   ;;  %s4714_s3 = inlined_call_operand.vmem [shape: bf16[8,512], index: 3, kind: input, shape index: {}]   ;;  %s4715_s4 = inlined_call_operand.vmem [shape: f32[1,512], index: 4, kind: input, shape index: {}]   ;;  %s4716_s5 = inlined_call_operand.hbm [shape: bf16[512,512], index: 5, kind: input, shape index: {}]   ;;  %s4717_s6 = inlined_call_operand.vmem [shape: f32[1,512], index: 6, kind: input, shape index: {}]   ;;  %s4718_s7 = inlined_call_operand.hbm [shape: bf16[512,512], index: 7, kind: input, shape index: {}]   ;;  %s4719_s8 = inlined_call_operand.vmem [shape: f32[1,512], index: 8, kind: input, shape index: {}]   ;;  %s4720_s9 = inlined_call_operand.hbm [shape: bf16[8,512], index: 9, kind: input, shape index: {}]   ;;  %s4721_s10 = inlined_call_operand.<no memory space> [shape: f32[1,1], index: 10, kind: input, shape index: {}]   ;;  %s4722_s11 = inlined_call_operand.vmem [shape: f32[1,1,8], index: 11, kind: output, shape index: {}]  }
   0x1   :  { %v16_v0 = vstv %s4721_s10 }
   0x2   :  { %17 = vst [vmem:[#allocation2] sm:$0x1] %v16_v0 }
   0x3   :  { %18 = vsyncpa [#allocation4], 0 }
   0x4   :  { %19 = vsyncpa [#allocation6], 0 }
   0x5   :  { %20 = vsyncpa [#allocation9], 0  ;;  %s46_s21 = sshll.u32 %s4716_s5, 4  ;;  %s4486_s22 = smov [#allocation5]   ;;  %s47_s21 = int_to_ptr.hbm [resolvable:$true] %s46_s21 }
   0x6   :  { %s48_s23 = sshll.u32 %s4486_s22, 4  ;;  %s29_s26 = sshll.u32 %s4713_s2, 4  ;;  %s49_s23 = int_to_ptr.vmem [resolvable:$true] %s48_s23  ;;  %s30_s26 = int_to_ptr.hbm [resolvable:$true] %s29_s26 }
   0x7   :  { %s4487_s27 = smov 256   ;;  %s4488_s28 = smov 16  }
   0x8   :  { %54 = dma.hbm_to_vmem [thread:$0]  %s47_s21, 16384, %s49_s23, [#allocation6], %s4487_s27, %s4487_s27, %s4488_s28  }
   0x9   :  { %s4489_s10 = smov [#allocation3]   ;;  %s61_s13 = sshll.u32 %s4718_s7, 4  ;;  %s62_s13 = int_to_ptr.hbm [resolvable:$true] %s61_s13 }
   0xa   :  { %s31_s29 = sshll.u32 %s4489_s10, 4  ;;  %s77_s15 = sshll.u32 %s4720_s9, 4  ;;  %s32_s29 = int_to_ptr.vmem [resolvable:$true] %s31_s29  ;;  %s78_s15 = int_to_ptr.hbm [resolvable:$true] %s77_s15 }
   0xb   :  { %37 = dma.hbm_to_vmem [thread:$0]  %s30_s26, 8192, %s32_s29, [#allocation4], %s4487_s27, %s4487_s27, %s4488_s28  }
   0xc   :  { %s4490_s16 = smov [#allocation7]   ;;  %s4491_s2 = smov [#allocation8]  }
   0xd   :  { %s63_s17 = sshll.u32 %s4490_s16, 4  ;;  %s79_s18 = sshll.u32 %s4491_s2, 4  ;;  %s64_s17 = int_to_ptr.vmem [resolvable:$true] %s63_s17  ;;  %s80_s18 = int_to_ptr.vmem [resolvable:$true] %s79_s18 }
   0xe   :  { %69 = dma.hbm_to_vmem [thread:$0]  %s62_s13, 16384, %s64_s17, [#allocation6], %s4487_s27, %s4487_s27, %s4488_s28  }
   0xf   :  { %82 = dma.hbm_to_vmem [thread:$0]  %s78_s15, 256, %s80_s18, [#allocation9]  }
  0x10   :  { %4480 = dma.done.wait [#allocation4], 8192  }
  0x11   :  { %4481 = vsyncadd [#allocation4], 4294959104 }
  0x12   :  { %4482 = dma.done.wait [#allocation6], 32768  }
  0x13   :  { %4483 = vsyncadd [#allocation6], 4294934528 }
  0x14   :  { %4484 = dma.done.wait [#allocation9], 256  }
  0x15   :  { %4485 = vsyncadd [#allocation9], 4294967040  ;;  %v172_v1 = vld [vmem:[%s4714_s3] sm:$0xff]  ;;  %vm188_vm0 = vcmask 1043456   ;;  %v173_v2 = vld [vmem:[%s4714_s3 + $0x8] sm:$0xff]  ;;  %vm184_vm1 = vcmask 64512  }
  0x16   :  { %v2890_v3 = vld [vmem:[#allocation3 + $0xe0] sm:$0xf]  ;;  %v176_v4 = vunpack.c.l.b16 %v172_v1  ;;  %v177_v5 = vunpack.c.h.b16 %v172_v1  ;;  %v178_v6 = vunpack.c.l.b16 %v173_v2  ;;  %v179_v7 = vunpack.c.h.b16 %v173_v2  ;;  %v4086_v8 = vld [vmem:[#allocation3 + $0xec] sm:$0xf0]  ;;  %v4084_v11 = vld [vmem:[#allocation3 + $0xe4] sm:$0xf] }
  0x17   :  { %v3018_v9 = vld [vmem:[#allocation3 + $0x1e0] sm:$0xf]  ;;  %v4118_v10 = vld [vmem:[#allocation3 + $0x1ec] sm:$0xf0]  ;;  %v2892_v12 = vld [vmem:[#allocation3 + $0xf0] sm:$0xf0]  ;;  %v2891_v20 = vor.u32 %v4086_v8, %v2890_v3 }
  0x18   :  { %v4116_v13 = vld [vmem:[#allocation3 + $0x1e4] sm:$0xf]  ;;  %v180_v14 = vpack.c.b16 %v176_v4, %v176_v4  ;;  %v181_v15 = vpack.c.b16 %v177_v5, %v177_v5  ;;  %v182_v16 = vpack.c.b16 %v178_v6, %v178_v6  ;;  %v183_v17 = vpack.c.b16 %v179_v7, %v179_v7  ;;  %v3020_v18 = vld [vmem:[#allocation3 + $0x1f0] sm:$0xf0]  ;;  %v2874_v19 = vld [vmem:[#allocation3 + $0xc0] sm:$0xf] }
  0x19   :  { %v3019_v21 = vor.u32 %v4118_v10, %v3018_v9  ;;  %v2895_v22 = vor.u32 %v4084_v11, %v2892_v12  ;;  %v3023_v23 = vor.u32 %v4116_v13, %v3020_v18  ;;  %v4082_v24 = vld [vmem:[#allocation3 + $0xcc] sm:$0xf0]  ;;  %v3002_v25 = vld [vmem:[#allocation3 + $0x1c0] sm:$0xf]  ;;  %v4080_v31 = vld [vmem:[#allocation3 + $0xc4] sm:$0xf] }
  0x1a   :  { %v4114_v26 = vld [vmem:[#allocation3 + $0x1cc] sm:$0xf0]  ;;  %v190_v27 = vsel %vm188_vm0, %v180_v14, 0  ;;  %v193_v28 = vsel %vm188_vm0, %v181_v15, 0  ;;  %v196_v29 = vsel %vm188_vm0, %v182_v16, 0  ;;  %v199_v30 = vsel %vm188_vm0, %v183_v17, 0 }
  0x1b   :  { %208 = vmatpush.bf16.msra.mxu0 %v190_v27  ;;  %221 = vmatpush.bf16.msra.mxu1 %v193_v28  ;;  %v2876_v32 = vld [vmem:[#allocation3 + $0xd0] sm:$0xf0]  ;;  %v4112_v33 = vld [vmem:[#allocation3 + $0x1c4] sm:$0xf]  ;;  %v2875_v35 = vor.u32 %v4082_v24, %v2874_v19  ;;  %v3003_v36 = vor.u32 %v4114_v26, %v3002_v25  ;;  %v2858_v37 = vld [vmem:[#allocation3 + $0xa0] sm:$0xf] }
  0x1c   :  { %v3004_v34 = vld [vmem:[#allocation3 + $0x1d0] sm:$0xf0]  ;;  %234 = vmatpush.bf16.msra.mxu2 %v196_v29  ;;  %247 = vmatpush.bf16.msra.mxu3 %v199_v30  ;;  %v4078_v38 = vld [vmem:[#allocation3 + $0xac] sm:$0xf0]  ;;  %v2879_v39 = vor.u32 %v4080_v31, %v2876_v32  ;;  %v2986_v41 = vld [vmem:[#allocation3 + $0x1a0] sm:$0xf] }
  0x1d   :  { %v3007_v40 = vor.u32 %v4112_v33, %v3004_v34  ;;  %v4110_v42 = vld [vmem:[#allocation3 + $0x1ac] sm:$0xf0]  ;;  %v4076_v43 = vld [vmem:[#allocation3 + $0xa4] sm:$0xf]  ;;  %v2860_v44 = vld [vmem:[#allocation3 + $0xb0] sm:$0xf0]  ;;  %v2859_v47 = vor.u32 %v4078_v38, %v2858_v37 }
  0x1e   :  { %v4108_v45 = vld [vmem:[#allocation3 + $0x1a4] sm:$0xf]  ;;  %v2988_v46 = vld [vmem:[#allocation3 + $0x1b0] sm:$0xf0]  ;;  %v2987_v48 = vor.u32 %v4110_v42, %v2986_v41  ;;  %v2842_v49 = vld [vmem:[#allocation3 + $0x80] sm:$0xf]  ;;  %v2863_v52 = vor.u32 %v4076_v43, %v2860_v44 }
  0x1f   :  { %573 = vmatpush.bf16.msrb.mxu0 %v2891_v20  ;;  %586 = vmatpush.bf16.msrb.mxu1 %v3019_v21  ;;  %v4074_v50 = vld [vmem:[#allocation3 + $0x8c] sm:$0xf0]  ;;  %v106_v51 = vld [vmem:[%s4712_s1] sm:$0xff]  ;;  %v2991_v53 = vor.u32 %v4108_v45, %v2988_v46  ;;  %v2844_v58 = vld [vmem:[#allocation3 + $0x90] sm:$0xf0]  ;;  %vm2763_vm2 = vcmask 57344  }
  0x20   :  { %599 = vmatpush.bf16.msrb.mxu2 %v2895_v22  ;;  %612 = vmatpush.bf16.msrb.mxu3 %v3023_v23  ;;  %v2970_v54 = vld [vmem:[#allocation3 + $0x180] sm:$0xf]  ;;  %v4106_v55 = vld [vmem:[#allocation3 + $0x18c] sm:$0xf0]  ;;  %v4072_v56 = vld [vmem:[#allocation3 + $0x84] sm:$0xf]  ;;  %v107_v57 = vpack.c.bf16 %v106_v51, %v106_v51  ;;  %v2843_v61 = vor.u32 %v4074_v50, %v2842_v49 }
  0x21   :  { %v4104_v59 = vld [vmem:[#allocation3 + $0x184] sm:$0xf]  ;;  %v2972_v60 = vld [vmem:[#allocation3 + $0x190] sm:$0xf0]  ;;  %v2971_v62 = vor.u32 %v4106_v55, %v2970_v54  ;;  %v2826_v63 = vld [vmem:[#allocation3 + $0x60] sm:$0xf]  ;;  %v2847_v1 = vor.u32 %v4072_v56, %v2844_v58 }
  0x22   :  { %2772 = vmatmul.msk.bf16.vlgmr.msra.gmra.mxu0 %vm184_vm1, %v107_v57  ;;  %2774 = vmatmul.msk.bf16.vlgmr.msra.gmra.mxu2 %vm184_vm1, %v107_v57  ;;  %v4070_v0 = vld [vmem:[#allocation3 + $0x6c] sm:$0xf0]  ;;  %v2975_v2 = vor.u32 %v4104_v59, %v2972_v60  ;;  %v2954_v3 = vld [vmem:[#allocation3 + $0x160] sm:$0xf]  ;;  %v4068_v5 = vld [vmem:[#allocation3 + $0x64] sm:$0xf] }
  0x23   :  { %574 = vmatpush.bf16.msrb.mxu0 %v2875_v35  ;;  %587 = vmatpush.bf16.msrb.mxu1 %v3003_v36  ;;  %v4102_v4 = vld [vmem:[#allocation3 + $0x16c] sm:$0xf0]  ;;  %v2828_v6 = vld [vmem:[#allocation3 + $0x70] sm:$0xf0]  ;;  %v4100_v7 = vld [vmem:[#allocation3 + $0x164] sm:$0xf]  ;;  %v2827_v9 = vor.u32 %v4070_v0, %v2826_v63 }
  0x24   :  { %600 = vmatpush.bf16.msrb.mxu2 %v2879_v39  ;;  %613 = vmatpush.bf16.msrb.mxu3 %v3007_v40  ;;  %v2956_v8 = vld [vmem:[#allocation3 + $0x170] sm:$0xf0]  ;;  %v2955_v10 = vor.u32 %v4102_v4, %v2954_v3  ;;  %v2810_v11 = vld [vmem:[#allocation3 + $0x40] sm:$0xf]  ;;  %v4066_v12 = vld [vmem:[#allocation3 + $0x4c] sm:$0xf0]  ;;  %v2831_v13 = vor.u32 %v4068_v5, %v2828_v6 }
  0x25   :  { %2773 = vmatmul.msk.bf16.vlgmr.msra.gmra.mxu1 %vm184_vm1, %v107_v57  ;;  %2775 = vmatmul.msk.bf16.vlgmr.msra.gmra.mxu3 %vm184_vm1, %v107_v57  ;;  %v2959_v14 = vor.u32 %v4100_v7, %v2956_v8  ;;  %v2938_v15 = vld [vmem:[#allocation3 + $0x140] sm:$0xf]  ;;  %v4098_v16 = vld [vmem:[#allocation3 + $0x14c] sm:$0xf0]  ;;  %v4064_v17 = vld [vmem:[#allocation3 + $0x44] sm:$0xf]  ;;  %v2811_v21 = vor.u32 %v4066_v12, %v2810_v11 }
  0x26   :  { %v2812_v18 = vld [vmem:[#allocation3 + $0x50] sm:$0xf0]  ;;  %v4096_v19 = vld [vmem:[#allocation3 + $0x144] sm:$0xf]  ;;  %v2939_v22 = vor.u32 %v4098_v16, %v2938_v15  ;;  %v2794_v23 = vld [vmem:[#allocation3 + $0x20] sm:$0xf] }
  0x27   :  { %575 = vmatpush.bf16.msrb.mxu0 %v2859_v47  ;;  %588 = vmatpush.bf16.msrb.mxu1 %v2987_v48  ;;  %v2940_v20 = vld [vmem:[#allocation3 + $0x150] sm:$0xf0]  ;;  %v4062_v24 = vld [vmem:[#allocation3 + $0x2c] sm:$0xf0]  ;;  %v2815_v25 = vor.u32 %v4064_v17, %v2812_v18  ;;  %v2922_v27 = vld [vmem:[#allocation3 + $0x120] sm:$0xf] }
  0x28   :  { %601 = vmatpush.bf16.msrb.mxu2 %v2863_v52  ;;  %614 = vmatpush.bf16.msrb.mxu3 %v2991_v53  ;;  %v2943_v26 = vor.u32 %v4096_v19, %v2940_v20  ;;  %v4094_v28 = vld [vmem:[#allocation3 + $0x12c] sm:$0xf0]  ;;  %v4060_v29 = vld [vmem:[#allocation3 + $0x24] sm:$0xf]  ;;  %v2796_v30 = vld [vmem:[#allocation3 + $0x30] sm:$0xf0]  ;;  %v2795_v34 = vor.u32 %v4062_v24, %v2794_v23 }
  0x29   :  { %v4092_v31 = vld [vmem:[#allocation3 + $0x124] sm:$0xf]  ;;  %v2924_v32 = vld [vmem:[#allocation3 + $0x130] sm:$0xf0]  ;;  %v2778_v33 = vld [vmem:[#allocation3] sm:$0xf]  ;;  %v2923_v35 = vor.u32 %v4094_v28, %v2922_v27  ;;  %v2799_v39 = vor.u32 %v4060_v29, %v2796_v30 }
  0x2a   :  { %v4058_v36 = vld [vmem:[#allocation3 + $0xc] sm:$0xf0]  ;;  %v2906_v37 = vld [vmem:[#allocation3 + $0x100] sm:$0xf]  ;;  %v2927_v40 = vor.u32 %v4092_v31, %v2924_v32  ;;  %v4056_v41 = vld [vmem:[#allocation3 + $0x4] sm:$0xf] }
  0x2b   :  { %576 = vmatpush.bf16.msrb.mxu0 %v2843_v61  ;;  %589 = vmatpush.bf16.msrb.mxu1 %v2971_v62  ;;  %v4090_v38 = vld [vmem:[#allocation3 + $0x10c] sm:$0xf0]  ;;  %v2780_v42 = vld [vmem:[#allocation3 + $0x10] sm:$0xf0]  ;;  %v4088_v43 = vld [vmem:[#allocation3 + $0x104] sm:$0xf]  ;;  %v2779_v50 = vor.u32 %v4058_v36, %v2778_v33 }
  0x2c   :  { %602 = vmatpush.bf16.msrb.mxu2 %v2847_v1  ;;  %615 = vmatpush.bf16.msrb.mxu3 %v2975_v2  ;;  %v2908_v44 = vld [vmem:[#allocation3 + $0x110] sm:$0xf0]  ;;  %v2898_v45 = vld [vmem:[#allocation3 + $0xe8] sm:$0xf]  ;;  %v4087_v46 = vld [vmem:[#allocation3 + $0xf4] sm:$0xf0]  ;;  %v2907_v51 = vor.u32 %v4090_v38, %v2906_v37  ;;  %v2783_v55 = vor.u32 %v4056_v41, %v2780_v42 }
  0x2d   :  { %v3026_v47 = vld [vmem:[#allocation3 + $0x1e8] sm:$0xf]  ;;  %v4119_v48 = vld [vmem:[#allocation3 + $0x1f4] sm:$0xf0]  ;;  %v4085_v49 = vld [vmem:[#allocation3 + $0xec] sm:$0xf]  ;;  %v2911_v56 = vor.u32 %v4088_v43, %v2908_v44  ;;  %v2899_v58 = vor.u32 %v4087_v46, %v2898_v45 }
  0x2e   :  { %v2900_v52 = vld [vmem:[#allocation3 + $0xf8] sm:$0xf0]  ;;  %v4117_v53 = vld [vmem:[#allocation3 + $0x1ec] sm:$0xf]  ;;  %v3027_v59 = vor.u32 %v4119_v48, %v3026_v47  ;;  %v2882_v61 = vld [vmem:[#allocation3 + $0xc8] sm:$0xf] }
  0x2f   :  { %577 = vmatpush.bf16.msrb.mxu0 %v2827_v9  ;;  %590 = vmatpush.bf16.msrb.mxu1 %v2955_v10  ;;  %v3028_v54 = vld [vmem:[#allocation3 + $0x1f8] sm:$0xf0]  ;;  %v103_v60 = vld [vmem:[%s4711_s0 + $0x8] sm:$0xff]  ;;  %v4083_v62 = vld [vmem:[#allocation3 + $0xd4] sm:$0xf0]  ;;  %v2903_v63 = vor.u32 %v4085_v49, %v2900_v52 }
  0x30   :  { %603 = vmatpush.bf16.msrb.mxu2 %v2831_v13  ;;  %616 = vmatpush.bf16.msrb.mxu3 %v2959_v14  ;;  %v102_v57 = vld [vmem:[%s4711_s0] sm:$0xff]  ;;  %v3031_v0 = vor.u32 %v4117_v53, %v3028_v54  ;;  %v3010_v1 = vld [vmem:[#allocation3 + $0x1c8] sm:$0xf]  ;;  %v4115_v2 = vld [vmem:[#allocation3 + $0x1d4] sm:$0xf0]  ;;  %v4593_v8 = vpack.c.bf16 %v103_v60, %v103_v60  ;;  %v2883_v9 = vor.u32 %v4083_v62, %v2882_v61 }
  0x31   :  { %v4081_v3 = vld [vmem:[#allocation3 + $0xcc] sm:$0xf]  ;;  %v4591_v4 = vpack.c.bf16 %v102_v57, %v102_v57  ;;  %v2884_v5 = vld [vmem:[#allocation3 + $0xd8] sm:$0xf0]  ;;  %v3011_v10 = vor.u32 %v4115_v2, %v3010_v1  ;;  %v2866_v11 = vld [vmem:[#allocation3 + $0xa8] sm:$0xf] }
  0x32   :  { %v4113_v6 = vld [vmem:[#allocation3 + $0x1cc] sm:$0xf]  ;;  %v3012_v7 = vld [vmem:[#allocation3 + $0x1d8] sm:$0xf0]  ;;  %v4079_v12 = vld [vmem:[#allocation3 + $0xb4] sm:$0xf0]  ;;  %v2887_v13 = vor.u32 %v4081_v3, %v2884_v5 }
  0x33   :  { %578 = vmatpush.bf16.msrb.mxu0 %v2811_v21  ;;  %591 = vmatpush.bf16.msrb.mxu1 %v2939_v22  ;;  %v3015_v14 = vor.u32 %v4113_v6, %v3012_v7  ;;  %v2994_v15 = vld [vmem:[#allocation3 + $0x1a8] sm:$0xf]  ;;  %v4111_v16 = vld [vmem:[#allocation3 + $0x1b4] sm:$0xf0]  ;;  %v4077_v17 = vld [vmem:[#allocation3 + $0xac] sm:$0xf]  ;;  %v2867_v21 = vor.u32 %v4079_v12, %v2866_v11 }
  0x34   :  { %604 = vmatpush.bf16.msrb.mxu2 %v2815_v25  ;;  %617 = vmatpush.bf16.msrb.mxu3 %v2943_v26  ;;  %v2868_v18 = vld [vmem:[#allocation3 + $0xb8] sm:$0xf0]  ;;  %v4109_v19 = vld [vmem:[#allocation3 + $0x1ac] sm:$0xf]  ;;  %v2995_v22 = vor.u32 %v4111_v16, %v2994_v15  ;;  %v2850_v23 = vld [vmem:[#allocation3 + $0x88] sm:$0xf] }
  0x35   :  { %v2996_v20 = vld [vmem:[#allocation3 + $0x1b8] sm:$0xf0]  ;;  %v4075_v24 = vld [vmem:[#allocation3 + $0x94] sm:$0xf0]  ;;  %v2871_v25 = vor.u32 %v4077_v17, %v2868_v18  ;;  %v2978_v27 = vld [vmem:[#allocation3 + $0x188] sm:$0xf] }
  0x36   :  { %v2999_v26 = vor.u32 %v4109_v19, %v2996_v20  ;;  %v4107_v28 = vld [vmem:[#allocation3 + $0x194] sm:$0xf0]  ;;  %v4073_v29 = vld [vmem:[#allocation3 + $0x8c] sm:$0xf]  ;;  %v2852_v30 = vld [vmem:[#allocation3 + $0x98] sm:$0xf0]  ;;  %v2851_v33 = vor.u32 %v4075_v24, %v2850_v23 }
  0x37   :  { %579 = vmatpush.bf16.msrb.mxu0 %v2795_v34  ;;  %592 = vmatpush.bf16.msrb.mxu1 %v2923_v35  ;;  %v4105_v31 = vld [vmem:[#allocation3 + $0x18c] sm:$0xf]  ;;  %v2980_v32 = vld [vmem:[#allocation3 + $0x198] sm:$0xf0]  ;;  %v2979_v34 = vor.u32 %v4107_v28, %v2978_v27  ;;  %v2834_v35 = vld [vmem:[#allocation3 + $0x68] sm:$0xf]  ;;  %v2855_v37 = vor.u32 %v4073_v29, %v2852_v30 }
  0x38   :  { %605 = vmatpush.bf16.msrb.mxu2 %v2799_v39  ;;  %618 = vmatpush.bf16.msrb.mxu3 %v2927_v40  ;;  %v4071_v36 = vld [vmem:[#allocation3 + $0x74] sm:$0xf0]  ;;  %v2983_v38 = vor.u32 %v4105_v31, %v2980_v32  ;;  %v2962_v39 = vld [vmem:[#allocation3 + $0x168] sm:$0xf]  ;;  %v4069_v41 = vld [vmem:[#allocation3 + $0x6c] sm:$0xf] }
  0x39   :  { %v4103_v40 = vld [vmem:[#allocation3 + $0x174] sm:$0xf0]  ;;  %v2836_v42 = vld [vmem:[#allocation3 + $0x78] sm:$0xf0]  ;;  %v4101_v43 = vld [vmem:[#allocation3 + $0x16c] sm:$0xf]  ;;  %v2835_v45 = vor.u32 %v4071_v36, %v2834_v35 }
  0x3a   :  { %v2964_v44 = vld [vmem:[#allocation3 + $0x178] sm:$0xf0]  ;;  %v2963_v46 = vor.u32 %v4103_v40, %v2962_v39  ;;  %v2818_v47 = vld [vmem:[#allocation3 + $0x48] sm:$0xf]  ;;  %v4067_v48 = vld [vmem:[#allocation3 + $0x54] sm:$0xf0]  ;;  %v2839_v49 = vor.u32 %v4069_v41, %v2836_v42 }
  0x3b   :  { %580 = vmatpush.bf16.msrb.mxu0 %v2779_v50  ;;  %593 = vmatpush.bf16.msrb.mxu1 %v2907_v51  ;;  %v2967_v50 = vor.u32 %v4101_v43, %v2964_v44  ;;  %v2946_v51 = vld [vmem:[#allocation3 + $0x148] sm:$0xf]  ;;  %v4099_v52 = vld [vmem:[#allocation3 + $0x154] sm:$0xf0]  ;;  %v4065_v53 = vld [vmem:[#allocation3 + $0x4c] sm:$0xf]  ;;  %v2819_v57 = vor.u32 %v4067_v48, %v2818_v47 }
  0x3c   :  { %606 = vmatpush.bf16.msrb.mxu2 %v2783_v55  ;;  %619 = vmatpush.bf16.msrb.mxu3 %v2911_v56  ;;  %v2820_v54 = vld [vmem:[#allocation3 + $0x58] sm:$0xf0]  ;;  %v4097_v55 = vld [vmem:[#allocation3 + $0x14c] sm:$0xf]  ;;  %v4063_v60 = vld [vmem:[#allocation3 + $0x34] sm:$0xf0] }
  0x3d   :  { %v2948_v56 = vld [vmem:[#allocation3 + $0x158] sm:$0xf0]  ;;  %v2823_v61 = vor.u32 %v4065_v53, %v2820_v54  ;;  %v4061_v1 = vld [vmem:[#allocation3 + $0x2c] sm:$0xf]  ;;  %v2914_v11 = vld [vmem:[#allocation3 + $0x108] sm:$0xf] }
  0x3e   :  { %581 = vmatmul.bf16.vlgmr.msrb.gmra.mxu0 %v4591_v4  ;;  %594 = vmatmul.bf16.vlgmr.msrb.gmra.mxu1 %v4593_v8  ;;  %v2951_v62 = vor.u32 %v4097_v55, %v2948_v56  ;;  %v2804_v2 = vld [vmem:[#allocation3 + $0x38] sm:$0xf0]  ;;  %v4093_v3 = vld [vmem:[#allocation3 + $0x12c] sm:$0xf]  ;;  %v3146_v19 = vld [vmem:[#allocation5 + $0xe0] sm:$0xf] }
  0x3f   :  { %625 = vmatpush.bf16.msra.mxu0 %v2899_v58  ;;  %638 = vmatpush.bf16.msra.mxu1 %v3027_v59  ;;  %v2947_v58 = vor.u32 %v4099_v52, %v2946_v51  ;;  %v2802_v59 = vld [vmem:[#allocation3 + $0x28] sm:$0xf]  ;;  %v2932_v5 = vld [vmem:[#allocation3 + $0x138] sm:$0xf0]  ;;  %v2807_v12 = vor.u32 %v4061_v1, %v2804_v2  ;;  %v4057_v15 = vld [vmem:[#allocation3 + $0xc] sm:$0xf] }
  0x40   :  { %651 = vmatpush.bf16.msra.mxu2 %v2903_v63  ;;  %664 = vmatpush.bf16.msra.mxu3 %v3031_v0  ;;  %v2930_v63 = vld [vmem:[#allocation3 + $0x128] sm:$0xf]  ;;  %v4095_v0 = vld [vmem:[#allocation3 + $0x134] sm:$0xf0]  ;;  %v2803_v6 = vor.u32 %v4063_v60, %v2802_v59  ;;  %v2788_v16 = vld [vmem:[#allocation3 + $0x18] sm:$0xf0] }
  0x41   :  { %607 = vmatmul.bf16.vlgmr.msrb.gmra.mxu2 %v4591_v4  ;;  %620 = vmatmul.bf16.vlgmr.msrb.gmra.mxu3 %v4593_v8  ;;  %v2931_v7 = vor.u32 %v4095_v0, %v2930_v63  ;;  %v4089_v17 = vld [vmem:[#allocation3 + $0x10c] sm:$0xf]  ;;  %v2916_v18 = vld [vmem:[#allocation3 + $0x118] sm:$0xf0]  ;;  %v4150_v20 = vld [vmem:[#allocation5 + $0xec] sm:$0xf0] }
  0x42   :  { %v3147_v27 = vor.u32 %v4150_v20, %v3146_v19  ;;  %v3130_v28 = vld [vmem:[#allocation5 + $0xc0] sm:$0xf]  ;;  %v4214_v31 = vld [vmem:[#allocation5 + $0x2ec] sm:$0xf0] }
  0x43   :  { %626 = vmatpush.bf16.msra.mxu0 %v2883_v9  ;;  %639 = vmatpush.bf16.msra.mxu1 %v3011_v10  ;;  %v2786_v9 = vld [vmem:[#allocation3 + $0x8] sm:$0xf]  ;;  %v4059_v10 = vld [vmem:[#allocation3 + $0x14] sm:$0xf0]  ;;  %v3402_v30 = vld [vmem:[#allocation5 + $0x2e0] sm:$0xf] }
  0x44   :  { %652 = vmatpush.bf16.msra.mxu2 %v2887_v13  ;;  %665 = vmatpush.bf16.msra.mxu3 %v3015_v14  ;;  %v2935_v13 = vor.u32 %v4093_v3, %v2932_v5  ;;  %v4091_v14 = vld [vmem:[#allocation3 + $0x114] sm:$0xf0]  ;;  %v2787_v23 = vor.u32 %v4059_v10, %v2786_v9  ;;  %v4146_v32 = vld [vmem:[#allocation5 + $0xcc] sm:$0xf0]  ;;  %v3403_v35 = vor.u32 %v4214_v31, %v3402_v30  ;;  %v3242_v40 = vld [vmem:[#allocation5 + $0x1a0] sm:$0xf] }
  0x45   :  { %v2915_v24 = vor.u32 %v4091_v14, %v2914_v11  ;;  %v3131_v36 = vor.u32 %v4146_v32, %v3130_v28  ;;  %v4142_v39 = vld [vmem:[#allocation5 + $0xac] sm:$0xf0]  ;;  %v3098_v43 = vld [vmem:[#allocation5 + $0x80] sm:$0xf]  ;;  %v4148_v5 = vld [vmem:[#allocation5 + $0xe4] sm:$0xf] }
  0x46   :  { %v4174_v41 = vld [vmem:[#allocation5 + $0x1ac] sm:$0xf0]  ;;  %v3210_v52 = vld [vmem:[#allocation5 + $0x160] sm:$0xf]  ;;  %v3132_v14 = vld [vmem:[#allocation5 + $0xd0] sm:$0xf0] }
  0x47   :  { %627 = vmatpush.bf16.msra.mxu0 %v2867_v21  ;;  %640 = vmatpush.bf16.msra.mxu1 %v2995_v22  ;;  %v3274_v21 = vld [vmem:[#allocation5 + $0x1e0] sm:$0xf]  ;;  %v4182_v22 = vld [vmem:[#allocation5 + $0x1ec] sm:$0xf0]  ;;  %v3243_v44 = vor.u32 %v4174_v41, %v3242_v40  ;;  %v4140_v28 = vld [vmem:[#allocation5 + $0xa4] sm:$0xf] }
  0x48   :  { %653 = vmatpush.bf16.msra.mxu2 %v2871_v25  ;;  %666 = vmatpush.bf16.msra.mxu3 %v2999_v26  ;;  %v2791_v25 = vor.u32 %v4057_v15, %v2788_v16  ;;  %v2919_v26 = vor.u32 %v4089_v17, %v2916_v18  ;;  %v3275_v29 = vor.u32 %v4182_v22, %v3274_v21  ;;  %v4170_v47 = vld [vmem:[#allocation5 + $0x18c] sm:$0xf0]  ;;  %v3194_v56 = vld [vmem:[#allocation5 + $0x140] sm:$0xf]  ;;  %v4180_v21 = vld [vmem:[#allocation5 + $0x1e4] sm:$0xf] }
  0x49   :  { %v4134_v51 = vld [vmem:[#allocation5 + $0x6c] sm:$0xf0]  ;;  %v3050_v59 = vld [vmem:[#allocation5 + $0x20] sm:$0xf]  ;;  %v3100_v41 = vld [vmem:[#allocation5 + $0x90] sm:$0xf0] }
  0x4a   :  { %v4166_v53 = vld [vmem:[#allocation5 + $0x16c] sm:$0xf0]  ;;  %v3034_v2 = vld [vmem:[#allocation5] sm:$0xf] }
  0x4b   :  { %628 = vmatpush.bf16.msra.mxu0 %v2851_v33  ;;  %641 = vmatpush.bf16.msra.mxu1 %v2979_v34  ;;  %v3258_v33 = vld [vmem:[#allocation5 + $0x1c0] sm:$0xf]  ;;  %v4178_v34 = vld [vmem:[#allocation5 + $0x1cc] sm:$0xf0]  ;;  %v3211_v54 = vor.u32 %v4166_v53, %v3210_v52  ;;  %v3084_v53 = vld [vmem:[#allocation5 + $0x70] sm:$0xf0] }
  0x4c   :  { %654 = vmatpush.bf16.msra.mxu2 %v2855_v37  ;;  %667 = vmatpush.bf16.msra.mxu3 %v2983_v38  ;;  %v3114_v37 = vld [vmem:[#allocation5 + $0xa0] sm:$0xf]  ;;  %v3259_v38 = vor.u32 %v4178_v34, %v3258_v33  ;;  %v4130_v55 = vld [vmem:[#allocation5 + $0x4c] sm:$0xf0]  ;;  %v4176_v33 = vld [vmem:[#allocation5 + $0x1c4] sm:$0xf] }
  0x4d   :  { %v3115_v42 = vor.u32 %v4142_v39, %v3114_v37  ;;  %v4158_v63 = vld [vmem:[#allocation5 + $0x12c] sm:$0xf0]  ;;  %v3386_v10 = vld [vmem:[#allocation5 + $0x2c0] sm:$0xf]  ;;  %v4136_v39 = vld [vmem:[#allocation5 + $0x84] sm:$0xf] }
  0x4e   :  { %v4122_v3 = vld [vmem:[#allocation5 + $0xc] sm:$0xf0]  ;;  %v3162_v15 = vld [vmem:[#allocation5 + $0x100] sm:$0xf] }
  0x4f   :  { %629 = vmatpush.bf16.msra.mxu0 %v2835_v45  ;;  %642 = vmatpush.bf16.msra.mxu1 %v2963_v46  ;;  %v4138_v45 = vld [vmem:[#allocation5 + $0x8c] sm:$0xf0]  ;;  %v3226_v46 = vld [vmem:[#allocation5 + $0x180] sm:$0xf] }
  0x50   :  { %655 = vmatpush.bf16.msra.mxu2 %v2839_v49  ;;  %668 = vmatpush.bf16.msra.mxu3 %v2967_v50  ;;  %v3099_v48 = vor.u32 %v4138_v45, %v3098_v43  ;;  %v3082_v49 = vld [vmem:[#allocation5 + $0x60] sm:$0xf]  ;;  %v3227_v50 = vor.u32 %v4170_v47, %v3226_v46  ;;  %v4210_v11 = vld [vmem:[#allocation5 + $0x2cc] sm:$0xf0]  ;;  %v4172_v46 = vld [vmem:[#allocation5 + $0x1a4] sm:$0xf] }
  0x51   :  { %v4154_v16 = vld [vmem:[#allocation5 + $0x10c] sm:$0xf0]  ;;  %v3530_v19 = vld [vmem:[#allocation5 + $0x3e0] sm:$0xf]  ;;  %v3244_v47 = vld [vmem:[#allocation5 + $0x1b0] sm:$0xf0] }
  0x52   :  { %v3163_v18 = vor.u32 %v4154_v16, %v3162_v15  ;;  %v4246_v20 = vld [vmem:[#allocation5 + $0x3ec] sm:$0xf0]  ;;  %v3514_v31 = vld [vmem:[#allocation5 + $0x3c0] sm:$0xf] }
  0x53   :  { %630 = vmatpush.bf16.msra.mxu0 %v2819_v57  ;;  %643 = vmatpush.bf16.msra.mxu1 %v2947_v58  ;;  %v4162_v57 = vld [vmem:[#allocation5 + $0x14c] sm:$0xf0]  ;;  %v3531_v22 = vor.u32 %v4246_v20, %v3530_v19  ;;  %v3354_v37 = vld [vmem:[#allocation5 + $0x280] sm:$0xf]  ;;  %v3196_v20 = vld [vmem:[#allocation5 + $0x150] sm:$0xf0] }
  0x54   :  { %656 = vmatpush.bf16.msra.mxu2 %v2823_v61  ;;  %669 = vmatpush.bf16.msra.mxu3 %v2951_v62  ;;  %v3195_v60 = vor.u32 %v4162_v57, %v3194_v56  ;;  %v4126_v61 = vld [vmem:[#allocation5 + $0x2c] sm:$0xf0]  ;;  %v3178_v62 = vld [vmem:[#allocation5 + $0x120] sm:$0xf]  ;;  %v3228_v57 = vld [vmem:[#allocation5 + $0x190] sm:$0xf0] }
  0x55   :  { %v3051_v0 = vor.u32 %v4126_v61, %v3050_v59  ;;  %v3179_v1 = vor.u32 %v4158_v63, %v3178_v62  ;;  %v4242_v32 = vld [vmem:[#allocation5 + $0x3cc] sm:$0xf0]  ;;  %v3322_v59 = vld [vmem:[#allocation5 + $0x240] sm:$0xf]  ;;  %v4128_v61 = vld [vmem:[#allocation5 + $0x44] sm:$0xf] }
  0x56   :  { %v3515_v34 = vor.u32 %v4242_v32, %v3514_v31  ;;  %v4238_v43 = vld [vmem:[#allocation5 + $0x3ac] sm:$0xf0]  ;;  %v3068_v63 = vld [vmem:[#allocation5 + $0x50] sm:$0xf0]  ;;  %v3450_v15 = vld [vmem:[#allocation5 + $0x340] sm:$0xf] }
  0x57   :  { %631 = vmatpush.bf16.msra.mxu0 %v2803_v6  ;;  %644 = vmatpush.bf16.msra.mxu1 %v2931_v7  ;;  %v3148_v6 = vld [vmem:[#allocation5 + $0xf0] sm:$0xf0]  ;;  %v3035_v7 = vor.u32 %v4122_v3, %v3034_v2  ;;  %v4230_v2 = vld [vmem:[#allocation5 + $0x36c] sm:$0xf0]  ;;  %v4164_v3 = vld [vmem:[#allocation5 + $0x164] sm:$0xf] }
  0x58   :  { %657 = vmatpush.bf16.msra.mxu2 %v2807_v12  ;;  %670 = vmatpush.bf16.msra.mxu3 %v2935_v13  ;;  %v3151_v9 = vor.u32 %v4148_v5, %v3148_v6  ;;  %v4144_v12 = vld [vmem:[#allocation5 + $0xc4] sm:$0xf]  ;;  %v3387_v13 = vor.u32 %v4210_v11, %v3386_v10  ;;  %v3212_v6 = vld [vmem:[#allocation5 + $0x170] sm:$0xf0]  ;;  %v4190_v10 = vld [vmem:[#allocation5 + $0x22c] sm:$0xf0] }
  0x59   :  { %v3135_v17 = vor.u32 %v4144_v12, %v3132_v14  ;;  %v4124_v12 = vld [vmem:[#allocation5 + $0x24] sm:$0xf]  ;;  %v4226_v16 = vld [vmem:[#allocation5 + $0x34c] sm:$0xf0]  ;;  %v3434_v32 = vld [vmem:[#allocation5 + $0x320] sm:$0xf] }
  0x5a   :  { %v3451_v19 = vor.u32 %v4226_v16, %v3450_v15  ;;  %v3468_v15 = vld [vmem:[#allocation5 + $0x370] sm:$0xf0] }
  0x5b   :  { %632 = vmatpush.bf16.msra.mxu0 %v2787_v23  ;;  %645 = vmatpush.bf16.msra.mxu1 %v2915_v24  ;;  %v3276_v23 = vld [vmem:[#allocation5 + $0x1f0] sm:$0xf0]  ;;  %v3370_v24 = vld [vmem:[#allocation5 + $0x2a0] sm:$0xf] }
  0x5c   :  { %658 = vmatpush.bf16.msra.mxu2 %v2791_v25  ;;  %671 = vmatpush.bf16.msra.mxu3 %v2919_v26  ;;  %v4206_v25 = vld [vmem:[#allocation5 + $0x2ac] sm:$0xf0]  ;;  %v3279_v26 = vor.u32 %v4180_v21, %v3276_v23 }
  0x5d   :  { %v4186_v23 = vld [vmem:[#allocation5 + $0x20c] sm:$0xf0] }
  0x5e   :  { %633 = vmatmul.bf16.vlgmr.msra.gmra.mxu0 %v4591_v4  ;;  %646 = vmatmul.bf16.vlgmr.msra.gmra.mxu1 %v4593_v8 }
  0x5f   :  { %1477 = vmatpush.bf16.msrb.mxu0 %v3147_v27  ;;  %1490 = vmatpush.bf16.msrb.mxu1 %v3275_v29  ;;  %v3371_v27 = vor.u32 %v4206_v25, %v3370_v24  ;;  %v3116_v29 = vld [vmem:[#allocation5 + $0xb0] sm:$0xf0]  ;;  %v4120_v24 = vld [vmem:[#allocation5 + $0x4] sm:$0xf] }
  0x60   :  { %659 = vmatmul.bf16.vlgmr.msra.gmra.mxu2 %v4591_v4  ;;  %672 = vmatmul.bf16.vlgmr.msra.gmra.mxu3 %v4593_v8  ;;  %v3083_v4 = vor.u32 %v4134_v51, %v3082_v49  ;;  %v3066_v8 = vld [vmem:[#allocation5 + $0x40] sm:$0xf]  ;;  %v3119_v30 = vor.u32 %v4140_v28, %v3116_v29  ;;  %v4132_v51 = vld [vmem:[#allocation5 + $0x64] sm:$0xf] }
  0x61   :  { %1503 = vmatpush.bf16.msrb.mxu2 %v3403_v35  ;;  %v3067_v58 = vor.u32 %v4130_v55, %v3066_v8  ;;  %1516 = vmatpush.bf16.msrb.mxu3 %v3531_v22  ;;  %v3260_v35 = vld [vmem:[#allocation5 + $0x1d0] sm:$0xf0]  ;;  %v3338_v49 = vld [vmem:[#allocation5 + $0x260] sm:$0xf]  ;;  %v4168_v55 = vld [vmem:[#allocation5 + $0x184] sm:$0xf] }
  0x62   :  { %v3482_v8 = vld [vmem:[#allocation5 + $0x380] sm:$0xf] }
  0x63   :  { %1478 = vmatpush.bf16.msrb.mxu0 %v3131_v36  ;;  %1491 = vmatpush.bf16.msrb.mxu1 %v3259_v38  ;;  %v3263_v36 = vor.u32 %v4176_v33, %v3260_v35  ;;  %v4202_v38 = vld [vmem:[#allocation5 + $0x28c] sm:$0xf0]  ;;  %v3290_v22 = vld [vmem:[#allocation5 + $0x200] sm:$0xf] }
  0x64   :  { %v3355_v40 = vor.u32 %v4202_v38, %v3354_v37  ;;  %v3291_v25 = vor.u32 %v4186_v23, %v3290_v22  ;;  %v4222_v33 = vld [vmem:[#allocation5 + $0x32c] sm:$0xf0]  ;;  %v4188_v22 = vld [vmem:[#allocation5 + $0x224] sm:$0xf]  ;;  %v3308_v23 = vld [vmem:[#allocation5 + $0x230] sm:$0xf0] }
  0x65   :  { %1504 = vmatpush.bf16.msrb.mxu2 %v3387_v13  ;;  %1517 = vmatpush.bf16.msrb.mxu3 %v3515_v34  ;;  %v3052_v13 = vld [vmem:[#allocation5 + $0x30] sm:$0xf0]  ;;  %v4156_v34 = vld [vmem:[#allocation5 + $0x124] sm:$0xf]  ;;  %v3435_v35 = vor.u32 %v4222_v33, %v3434_v32  ;;  %v4151_v32 = vld [vmem:[#allocation5 + $0xf4] sm:$0xf0] }
  0x66   :  { %v3055_v14 = vor.u32 %v4124_v12, %v3052_v13  ;;  %v4614_v12 = vld [vmem:[%s4715_s4] sm:$0xf]  ;;  %v4184_v33 = vld [vmem:[#allocation5 + $0x204] sm:$0xf] }
  0x67   :  { %1479 = vmatpush.bf16.msrb.mxu0 %v3115_v42  ;;  %1492 = vmatpush.bf16.msrb.mxu1 %v3243_v44  ;;  %v3498_v42 = vld [vmem:[#allocation5 + $0x3a0] sm:$0xf]  ;;  %v3103_v44 = vor.u32 %v4136_v39, %v3100_v41  ;;  %v4208_v39 = vld [vmem:[#allocation5 + $0x2c4] sm:$0xf] }
  0x68   :  { %v3499_v45 = vor.u32 %v4238_v43, %v3498_v42  ;;  %v3418_v42 = vld [vmem:[#allocation5 + $0x300] sm:$0xf]  ;;  %v4218_v43 = vld [vmem:[#allocation5 + $0x30c] sm:$0xf0] }
  0x69   :  { %1505 = vmatpush.bf16.msrb.mxu2 %v3371_v27  ;;  %v4212_v27 = vld [vmem:[#allocation5 + $0x2e4] sm:$0xf] }
  0x6a   :  { %1518 = vmatpush.bf16.msrb.mxu3 %v3499_v45  ;;  %v3419_v45 = vor.u32 %v4218_v43, %v3418_v42  ;;  %v4220_v43 = vld [vmem:[#allocation5 + $0x324] sm:$0xf] }
  0x6b   :  { %1480 = vmatpush.bf16.msrb.mxu0 %v3099_v48  ;;  %1493 = vmatpush.bf16.msrb.mxu1 %v3227_v50  ;;  %v3247_v48 = vor.u32 %v4172_v46, %v3244_v47  ;;  %v4198_v50 = vld [vmem:[#allocation5 + $0x26c] sm:$0xf0]  ;;  %v4152_v46 = vld [vmem:[#allocation5 + $0x104] sm:$0xf]  ;;  %v3164_v47 = vld [vmem:[#allocation5 + $0x110] sm:$0xf0] }
  0x6c   :  { %v3339_v52 = vor.u32 %v4198_v50, %v3338_v49  ;;  %v3167_v50 = vor.u32 %v4152_v46, %v3164_v47  ;;  %v3138_v47 = vld [vmem:[#allocation5 + $0xc8] sm:$0xf] }
  0x6d   :  { %1506 = vmatpush.bf16.msrb.mxu2 %v3355_v40  ;;  %v3388_v40 = vld [vmem:[#allocation5 + $0x2d0] sm:$0xf0] }
  0x6e   :  { %v3391_v41 = vor.u32 %v4208_v39, %v3388_v40  ;;  %v680_v40 = vperm.slane %v4614_v12, 1 }
  0x6f   :  { %1481 = vmatpush.bf16.msrb.mxu0 %v3083_v4  ;;  %1494 = vmatpush.bf16.msrb.mxu1 %v3211_v54  ;;  %v3087_v4 = vor.u32 %v4132_v51, %v3084_v53  ;;  %v4234_v54 = vld [vmem:[#allocation5 + $0x38c] sm:$0xf0]  ;;  %v3532_v51 = vld [vmem:[#allocation5 + $0x3f0] sm:$0xf0]  ;;  %v4204_v53 = vld [vmem:[#allocation5 + $0x2a4] sm:$0xf] }
  0x70   :  { %v3483_v56 = vor.u32 %v4234_v54, %v3482_v8 }
  0x71   :  { %1507 = vmatpush.bf16.msrb.mxu2 %v3339_v52 }
  0x72   :  { %1519 = vmatpush.bf16.msrb.mxu3 %v3483_v56  ;;  %v3516_v56 = vld [vmem:[#allocation5 + $0x3d0] sm:$0xf0] }
  0x73   :  { %1482 = vmatpush.bf16.msrb.mxu0 %v3067_v58  ;;  %1495 = vmatpush.bf16.msrb.mxu1 %v3195_v60  ;;  %v3231_v58 = vor.u32 %v4168_v55, %v3228_v57  ;;  %v4194_v60 = vld [vmem:[#allocation5 + $0x24c] sm:$0xf0]  ;;  %v4240_v55 = vld [vmem:[#allocation5 + $0x3c4] sm:$0xf] }
  0x74   :  { %v3323_v62 = vor.u32 %v4194_v60, %v3322_v59  ;;  %v3519_v57 = vor.u32 %v4240_v55, %v3516_v56  ;;  %v4200_v59 = vld [vmem:[#allocation5 + $0x284] sm:$0xf]  ;;  %v3356_v60 = vld [vmem:[#allocation5 + $0x290] sm:$0xf0] }
  0x76   :  { %1508 = vmatpush.bf16.msrb.mxu2 %v3323_v62  ;;  %v4236_v62 = vld [vmem:[#allocation5 + $0x3a4] sm:$0xf] }
  0x77   :  { %1483 = vmatpush.bf16.msrb.mxu0 %v3051_v0  ;;  %1496 = vmatpush.bf16.msrb.mxu1 %v3179_v1  ;;  %v3071_v0 = vor.u32 %v4128_v61, %v3068_v63  ;;  %v3466_v1 = vld [vmem:[#allocation5 + $0x360] sm:$0xf]  ;;  %v3359_v61 = vor.u32 %v4200_v59, %v3356_v60  ;;  %v3500_v63 = vld [vmem:[#allocation5 + $0x3b0] sm:$0xf0] }
  0x78   :  { %v3467_v5 = vor.u32 %v4230_v2, %v3466_v1  ;;  %v3503_v1 = vor.u32 %v4236_v62, %v3500_v63  ;;  %v4196_v2 = vld [vmem:[#allocation5 + $0x264] sm:$0xf]  ;;  %v3266_v63 = vld [vmem:[#allocation5 + $0x1c8] sm:$0xf] }
  0x7a   :  { %1520 = vmatpush.bf16.msrb.mxu3 %v3467_v5 }
  0x7b   :  { %1484 = vmatpush.bf16.msrb.mxu0 %v3035_v7  ;;  %1497 = vmatpush.bf16.msrb.mxu1 %v3163_v18  ;;  %v3215_v7 = vor.u32 %v4164_v3, %v3212_v6  ;;  %v3340_v3 = vld [vmem:[#allocation5 + $0x270] sm:$0xf0]  ;;  %v4232_v6 = vld [vmem:[#allocation5 + $0x384] sm:$0xf] }
  0x7c   :  { %v3343_v5 = vor.u32 %v4196_v2, %v3340_v3  ;;  %v3106_v2 = vld [vmem:[#allocation5 + $0x88] sm:$0xf]  ;;  %v4139_v3 = vld [vmem:[#allocation5 + $0x94] sm:$0xf0] }
  0x7e   :  { %1521 = vmatpush.bf16.msrb.mxu3 %v3451_v19 }
  0x7f   :  { %1529 = vmatpush.bf16.msra.mxu0 %v3151_v9  ;;  %1542 = vmatpush.bf16.msra.mxu1 %v3279_v26  ;;  %v3306_v9 = vld [vmem:[#allocation5 + $0x220] sm:$0xf]  ;;  %v3036_v26 = vld [vmem:[#allocation5 + $0x10] sm:$0xf0] }
  0x80   :  { %v3307_v11 = vor.u32 %v4190_v10, %v3306_v9  ;;  %v3039_v29 = vor.u32 %v4120_v24, %v3036_v26  ;;  %v4192_v10 = vld [vmem:[#allocation5 + $0x244] sm:$0xf]  ;;  %v3311_v24 = vor.u32 %v4188_v22, %v3308_v23  ;;  %v4167_v22 = vld [vmem:[#allocation5 + $0x174] sm:$0xf0] }
  0x81   :  { %v4224_v26 = vld [vmem:[#allocation5 + $0x344] sm:$0xf] }
  0x82   :  { %1509 = vmatpush.bf16.msrb.mxu2 %v3307_v11  ;;  %1522 = vmatpush.bf16.msrb.mxu3 %v3435_v35  ;;  %v3324_v11 = vld [vmem:[#allocation5 + $0x250] sm:$0xf0] }
  0x83   :  { %1530 = vmatpush.bf16.msra.mxu0 %v3135_v17  ;;  %1543 = vmatpush.bf16.msra.mxu1 %v3263_v36  ;;  %v4160_v17 = vld [vmem:[#allocation5 + $0x144] sm:$0xf]  ;;  %v3180_v36 = vld [vmem:[#allocation5 + $0x130] sm:$0xf0]  ;;  %v3327_v13 = vor.u32 %v4192_v10, %v3324_v11  ;;  %v3090_v10 = vld [vmem:[#allocation5 + $0x68] sm:$0xf] }
  0x84   :  { %v3199_v21 = vor.u32 %v4160_v17, %v3196_v20  ;;  %v3183_v38 = vor.u32 %v4156_v34, %v3180_v36  ;;  %v3292_v34 = vld [vmem:[#allocation5 + $0x210] sm:$0xf0]  ;;  %v4135_v11 = vld [vmem:[#allocation5 + $0x74] sm:$0xf0] }
  0x86   :  { %1510 = vmatpush.bf16.msrb.mxu2 %v3291_v25  ;;  %1523 = vmatpush.bf16.msrb.mxu3 %v3419_v45 }
  0x87   :  { %1531 = vmatpush.bf16.msra.mxu0 %v3119_v30  ;;  %1544 = vmatpush.bf16.msra.mxu1 %v3247_v48  ;;  %v3404_v30 = vld [vmem:[#allocation5 + $0x2f0] sm:$0xf0]  ;;  %v4244_v48 = vld [vmem:[#allocation5 + $0x3e4] sm:$0xf] }
  0x88   :  { %v3407_v31 = vor.u32 %v4212_v27, %v3404_v30  ;;  %v3535_v52 = vor.u32 %v4244_v48, %v3532_v51  ;;  %v3452_v27 = vld [vmem:[#allocation5 + $0x350] sm:$0xf0]  ;;  %v4147_v48 = vld [vmem:[#allocation5 + $0xd4] sm:$0xf0] }
  0x89   :  { %v3455_v30 = vor.u32 %v4224_v26, %v3452_v27  ;;  %v3058_v26 = vld [vmem:[#allocation5 + $0x28] sm:$0xf]  ;;  %v4127_v27 = vld [vmem:[#allocation5 + $0x34] sm:$0xf0] }
  0x8a   :  { %1555 = vmatpush.bf16.msra.mxu2 %v3407_v31  ;;  %1568 = vmatpush.bf16.msra.mxu3 %v3535_v52  ;;  %v3282_v52 = vld [vmem:[#allocation5 + $0x1e8] sm:$0xf] }
  0x8b   :  { %1532 = vmatpush.bf16.msra.mxu0 %v3103_v44  ;;  %1545 = vmatpush.bf16.msra.mxu1 %v3231_v58 }
  0x8e   :  { %1556 = vmatpush.bf16.msra.mxu2 %v3391_v41  ;;  %1569 = vmatpush.bf16.msra.mxu3 %v3519_v57  ;;  %v3122_v57 = vld [vmem:[#allocation5 + $0xa8] sm:$0xf] }
  0x8f   :  { %1533 = vmatpush.bf16.msra.mxu0 %v3087_v4  ;;  %1546 = vmatpush.bf16.msra.mxu1 %v3215_v7  ;;  %v3372_v4 = vld [vmem:[#allocation5 + $0x2b0] sm:$0xf0] }
  0x90   :  { %v3375_v54 = vor.u32 %v4204_v53, %v3372_v4  ;;  %v3484_v7 = vld [vmem:[#allocation5 + $0x390] sm:$0xf0]  ;;  %v4216_v4 = vld [vmem:[#allocation5 + $0x304] sm:$0xf] }
  0x91   :  { %v3487_v9 = vor.u32 %v4232_v6, %v3484_v7  ;;  %v3250_v6 = vld [vmem:[#allocation5 + $0x1a8] sm:$0xf]  ;;  %v4175_v7 = vld [vmem:[#allocation5 + $0x1b4] sm:$0xf0] }
  0x92   :  { %1557 = vmatpush.bf16.msra.mxu2 %v3375_v54  ;;  %1570 = vmatpush.bf16.msra.mxu3 %v3503_v1  ;;  %v3139_v54 = vor.u32 %v4147_v48, %v3138_v47 }
  0x93   :  { %1534 = vmatpush.bf16.msra.mxu0 %v3071_v0  ;;  %1547 = vmatpush.bf16.msra.mxu1 %v3199_v21  ;;  %v679_v21 = vperm.slane %v4614_v12, 0 }
  0x96   :  { %1558 = vmatpush.bf16.msra.mxu2 %v3359_v61  ;;  %1571 = vmatpush.bf16.msra.mxu3 %v3487_v9  ;;  %v3107_v9 = vor.u32 %v4139_v3, %v3106_v2  ;;  %v3538_v3 = vld [vmem:[#allocation5 + $0x3e8] sm:$0xf] }
  0x97   :  { %1535 = vmatpush.bf16.msra.mxu0 %v3055_v14  ;;  %1548 = vmatpush.bf16.msra.mxu1 %v3183_v38  ;;  %v4228_v14 = vld [vmem:[#allocation5 + $0x364] sm:$0xf] }
  0x98   :  { %v3471_v17 = vor.u32 %v4228_v14, %v3468_v15  ;;  %v3234_v14 = vld [vmem:[#allocation5 + $0x188] sm:$0xf]  ;;  %v4171_v15 = vld [vmem:[#allocation5 + $0x194] sm:$0xf0] }
  0x9a   :  { %1559 = vmatpush.bf16.msra.mxu2 %v3343_v5  ;;  %1572 = vmatpush.bf16.msra.mxu3 %v3471_v17  ;;  %v3074_v17 = vld [vmem:[#allocation5 + $0x48] sm:$0xf] }
  0x9b   :  { %1536 = vmatpush.bf16.msra.mxu0 %v3039_v29  ;;  %1549 = vmatpush.bf16.msra.mxu1 %v3167_v50  ;;  %v3154_v29 = vld [vmem:[#allocation5 + $0xe8] sm:$0xf] }
  0x9c   :  { %v3155_v41 = vor.u32 %v4151_v32, %v3154_v29  ;;  %v3202_v32 = vld [vmem:[#allocation5 + $0x148] sm:$0xf] }
  0x9e   :  { %1560 = vmatpush.bf16.msra.mxu2 %v3327_v13  ;;  %1573 = vmatpush.bf16.msra.mxu3 %v3455_v30  ;;  %v3251_v13 = vor.u32 %v4175_v7, %v3250_v6  ;;  %v681_v30 = vperm.slane %v4614_v12, 2  ;;  %v3378_v6 = vld [vmem:[#allocation5 + $0x2a8] sm:$0xf] }
  0x9f   :  { %v4603_v18 = vpop.f32.mrf.mxu0 }
  0xa2   :  { %v4605_v28 = vpop.f32.mrf.mxu1  ;;  %1561 = vmatpush.bf16.msra.mxu2 %v3311_v24 }
  0xa5   :  { %v4607_v37 = vpop.f32.mrf.mxu2 }
  0xa7   :  { %v212_v44 = vpop.f32.mrf.mxu0 }
  0xa8   :  { %v4609_v49 = vpop.f32.mrf.mxu3  ;;  %v3436_v44 = vld [vmem:[#allocation5 + $0x330] sm:$0xf0] }
  0xa9   :  { %v3439_v51 = vor.u32 %v4220_v43, %v3436_v44  ;;  %v3186_v43 = vld [vmem:[#allocation5 + $0x128] sm:$0xf]  ;;  %v4159_v44 = vld [vmem:[#allocation5 + $0x134] sm:$0xf0] }
  0xaa   :  { %v225_v8 = vpop.f32.mrf.mxu1 }
  0xab   :  { %1574 = vmatpush.bf16.msra.mxu3 %v3439_v51  ;;  %v3420_v8 = vld [vmem:[#allocation5 + $0x310] sm:$0xf0] }
  0xac   :  { %v3423_v55 = vor.u32 %v4216_v4, %v3420_v8 }
  0xad   :  { %v238_v58 = vpop.f32.mrf.mxu2 }
  0xae   :  { %v4143_v58 = vld [vmem:[#allocation5 + $0xb4] sm:$0xf0] }
  0xaf   :  { %1575 = vmatpush.bf16.msra.mxu3 %v3423_v55  ;;  %v3123_v1 = vor.u32 %v4143_v58, %v3122_v57  ;;  %v4211_v57 = vld [vmem:[#allocation5 + $0x2d4] sm:$0xf0]  ;;  %v4145_v58 = vld [vmem:[#allocation5 + $0xcc] sm:$0xf] }
  0xb0   :  { %v251_v0 = vpop.f32.mrf.mxu3 }
  0xb1   :  { %v4179_v0 = vld [vmem:[#allocation5 + $0x1d4] sm:$0xf0] }
  0xb2   :  { %v3267_v5 = vor.u32 %v4179_v0, %v3266_v63  ;;  %v4155_v63 = vld [vmem:[#allocation5 + $0x114] sm:$0xf0] }
  0xbb   :  { %v582_v16 = vpop.f32.mrf.mxu0  ;;  %v595_v20 = vpop.f32.mrf.mxu1 }
  0xbc   :  { %v583_v19 = vadd.f32 %v582_v16, %v4603_v18  ;;  %v3295_v18 = vor.u32 %v4184_v33, %v3292_v34  ;;  %v3091_v16 = vor.u32 %v4135_v11, %v3090_v10  ;;  %v4163_v33 = vld [vmem:[#allocation5 + $0x154] sm:$0xf0]  ;;  %v4141_v10 = vld [vmem:[#allocation5 + $0xac] sm:$0xf]  ;;  %v3124_v11 = vld [vmem:[#allocation5 + $0xb8] sm:$0xf0] }
  0xbe   :  { %v596_v25 = vadd.f32 %v595_v20, %v583_v19  ;;  %1562 = vmatpush.bf16.msra.mxu2 %v3295_v18  ;;  %v4131_v19 = vld [vmem:[#allocation5 + $0x54] sm:$0xf0]  ;;  %v3235_v20 = vor.u32 %v4171_v15, %v3234_v14  ;;  %v3042_v18 = vld [vmem:[#allocation5 + $0x8] sm:$0xf] }
  0xbf   :  { %v3075_v23 = vor.u32 %v4131_v19, %v3074_v17  ;;  %v4177_v19 = vld [vmem:[#allocation5 + $0x1cc] sm:$0xf] }
  0xc0   :  { %v687_v31 = vadd.f32 %v679_v21, %v596_v25  ;;  %v3218_v21 = vld [vmem:[#allocation5 + $0x168] sm:$0xf] }
  0xc2   :  { %v691_v36 = vmax.f32 %v687_v31, 0.0  ;;  %v3219_v31 = vor.u32 %v4167_v22, %v3218_v21 }
  0xc3   :  { %v584_v42 = vpop.f32.mrf.mxu0  ;;  %v597_v50 = vpop.f32.mrf.mxu1 }
  0xc4   :  { %v608_v35 = vpop.f32.mrf.mxu2  ;;  %v621_v39 = vpop.f32.mrf.mxu3  ;;  %v4620_v45 = vpack.c.bf16 %v691_v36, %v691_v36  ;;  %v4123_v36 = vld [vmem:[#allocation5 + $0x14] sm:$0xf0]  ;;  %v4149_v42 = vld [vmem:[#allocation5 + $0xec] sm:$0xf] }
  0xc5   :  { %v609_v38 = vadd.f32 %v608_v35, %v4605_v28  ;;  %v4183_v28 = vld [vmem:[#allocation5 + $0x1f4] sm:$0xf0]  ;;  %v3059_v35 = vor.u32 %v4127_v27, %v3058_v26  ;;  %v3043_v50 = vor.u32 %v4123_v36, %v3042_v18  ;;  %v3362_v26 = vld [vmem:[#allocation5 + $0x288] sm:$0xf] }
  0xc6   :  { %1485 = vmatmul.bf16.vlgmr.msrb.gmra.mxu0 %v4620_v45  ;;  %v3283_v59 = vor.u32 %v4183_v28, %v3282_v52  ;;  %v682_v52 = vperm.slane %v4614_v12, 3  ;;  %v3284_v12 = vld [vmem:[#allocation5 + $0x1f8] sm:$0xf0]  ;;  %v4203_v27 = vld [vmem:[#allocation5 + $0x294] sm:$0xf0] }
  0xc7   :  { %v622_v46 = vadd.f32 %v621_v39, %v609_v38  ;;  %1581 = vmatpush.bf16.msrb.mxu0 %v3155_v41  ;;  %v3410_v38 = vld [vmem:[#allocation5 + $0x2e8] sm:$0xf]  ;;  %v4215_v41 = vld [vmem:[#allocation5 + $0x2f4] sm:$0xf0] }
  0xc8   :  { %v3411_v4 = vor.u32 %v4215_v41, %v3410_v38  ;;  %v3506_v36 = vld [vmem:[#allocation5 + $0x3a8] sm:$0xf]  ;;  %v4239_v38 = vld [vmem:[#allocation5 + $0x3b4] sm:$0xf0]  ;;  %v4133_v41 = vld [vmem:[#allocation5 + $0x6c] sm:$0xf] }
  0xc9   :  { %v688_v53 = vadd.f32 %v680_v40, %v622_v46  ;;  %v3203_v40 = vor.u32 %v4163_v33, %v3202_v32  ;;  %v4173_v33 = vld [vmem:[#allocation5 + $0x1ac] sm:$0xf] }
  0xcb   :  { %v692_v56 = vmax.f32 %v688_v53, 0.0  ;;  %1582 = vmatpush.bf16.msrb.mxu0 %v3139_v54  ;;  %v3394_v54 = vld [vmem:[#allocation5 + $0x2c8] sm:$0xf] }
  0xcc   :  { %v610_v60 = vpop.f32.mrf.mxu2  ;;  %v623_v62 = vpop.f32.mrf.mxu3 }
  0xcd   :  { %v4623_v61 = vpack.c.bf16 %v692_v56, %v692_v56  ;;  %v3187_v56 = vor.u32 %v4159_v44, %v3186_v43  ;;  %v3170_v62 = vld [vmem:[#allocation5 + $0x108] sm:$0xf]  ;;  %v3507_v43 = vor.u32 %v4239_v38, %v3506_v36  ;;  %v4169_v44 = vld [vmem:[#allocation5 + $0x18c] sm:$0xf]  ;;  %v4219_v36 = vld [vmem:[#allocation5 + $0x314] sm:$0xf0] }
  0xce   :  { %v3171_v7 = vor.u32 %v4155_v63, %v3170_v62  ;;  %v4231_v62 = vld [vmem:[#allocation5 + $0x374] sm:$0xf0]  ;;  %v3314_v63 = vld [vmem:[#allocation5 + $0x228] sm:$0xf] }
  0xcf   :  { %1498 = vmatmul.bf16.vlgmr.msrb.gmra.mxu1 %v4623_v61  ;;  %1583 = vmatpush.bf16.msrb.mxu0 %v3123_v1  ;;  %v3395_v1 = vor.u32 %v4211_v57, %v3394_v54  ;;  %v3220_v57 = vld [vmem:[#allocation5 + $0x178] sm:$0xf0] }
  0xd0   :  { %1594 = vmatpush.bf16.msrb.mxu1 %v3283_v59  ;;  %v3140_v59 = vld [vmem:[#allocation5 + $0xd8] sm:$0xf0] }
  0xd1   :  { %v3143_v2 = vor.u32 %v4145_v58, %v3140_v59 }
  0xd3   :  { %1584 = vmatpush.bf16.msrb.mxu0 %v3107_v9  ;;  %v4207_v9 = vld [vmem:[#allocation5 + $0x2b4] sm:$0xf0] }
  0xd4   :  { %1595 = vmatpush.bf16.msrb.mxu1 %v3267_v5  ;;  %v4247_v5 = vld [vmem:[#allocation5 + $0x3f4] sm:$0xf0]  ;;  %v3379_v22 = vor.u32 %v4207_v9, %v3378_v6  ;;  %v3458_v9 = vld [vmem:[#allocation5 + $0x348] sm:$0xf] }
  0xd5   :  { %v3539_v17 = vor.u32 %v4247_v5, %v3538_v3  ;;  %v4161_v3 = vld [vmem:[#allocation5 + $0x14c] sm:$0xf]  ;;  %v3204_v5 = vld [vmem:[#allocation5 + $0x158] sm:$0xf0] }
  0xd6   :  { %1537 = vmatmul.bf16.vlgmr.msra.gmra.mxu0 %v4620_v45 }
  0xd7   :  { %1585 = vmatpush.bf16.msrb.mxu0 %v3091_v16 }
  0xd8   :  { %1596 = vmatpush.bf16.msrb.mxu1 %v3251_v13 }
  0xdb   :  { %v634_v24 = vpop.f32.mrf.mxu0  ;;  %v647_v25 = vpop.f32.mrf.mxu1  ;;  %1586 = vmatpush.bf16.msrb.mxu0 %v3075_v23  ;;  %v3127_v23 = vor.u32 %v4141_v10, %v3124_v11  ;;  %v4227_v10 = vld [vmem:[#allocation5 + $0x354] sm:$0xf0]  ;;  %v3298_v11 = vld [vmem:[#allocation5 + $0x208] sm:$0xf] }
  0xdc   :  { %v635_v29 = vadd.f32 %v634_v24, %v4607_v37  ;;  %1597 = vmatpush.bf16.msrb.mxu1 %v3235_v20  ;;  %v3156_v37 = vld [vmem:[#allocation5 + $0xf8] sm:$0xf0]  ;;  %v3522_v24 = vld [vmem:[#allocation5 + $0x3c8] sm:$0xf] }
  0xdd   :  { %v3159_v8 = vor.u32 %v4149_v42, %v3156_v37  ;;  %v3268_v20 = vld [vmem:[#allocation5 + $0x1d8] sm:$0xf0] }
  0xde   :  { %v648_v34 = vadd.f32 %v647_v25, %v635_v29  ;;  %v4243_v25 = vld [vmem:[#allocation5 + $0x3d4] sm:$0xf0]  ;;  %v4137_v29 = vld [vmem:[#allocation5 + $0x8c] sm:$0xf]  ;;  %v3092_v42 = vld [vmem:[#allocation5 + $0x78] sm:$0xf0] }
  0xdf   :  { %1550 = vmatmul.bf16.vlgmr.msra.gmra.mxu1 %v4623_v61  ;;  %1587 = vmatpush.bf16.msrb.mxu0 %v3059_v35  ;;  %v3523_v32 = vor.u32 %v4243_v25, %v3522_v24  ;;  %v3363_v35 = vor.u32 %v4203_v27, %v3362_v26  ;;  %v3442_v26 = vld [vmem:[#allocation5 + $0x328] sm:$0xf]  ;;  %v4223_v27 = vld [vmem:[#allocation5 + $0x334] sm:$0xf0] }
  0xe0   :  { %v689_v39 = vadd.f32 %v681_v30, %v648_v34  ;;  %1598 = vmatpush.bf16.msrb.mxu1 %v3219_v31  ;;  %v3108_v30 = vld [vmem:[#allocation5 + $0x98] sm:$0xf0]  ;;  %v3271_v31 = vor.u32 %v4177_v19, %v3268_v20  ;;  %v3459_v20 = vor.u32 %v4227_v10, %v3458_v9  ;;  %v4189_v10 = vld [vmem:[#allocation5 + $0x22c] sm:$0xf] }
  0xe1   :  { %v3252_v34 = vld [vmem:[#allocation5 + $0x1b8] sm:$0xf0]  ;;  %v3111_v18 = vor.u32 %v4137_v29, %v3108_v30 }
  0xe2   :  { %v693_v46 = vmax.f32 %v689_v39, 0.0  ;;  %v3346_v39 = vld [vmem:[#allocation5 + $0x268] sm:$0xf]  ;;  %v3255_v37 = vor.u32 %v4173_v33, %v3252_v34  ;;  %v3412_v19 = vld [vmem:[#allocation5 + $0x2f8] sm:$0xf0]  ;;  %v3443_v33 = vor.u32 %v4223_v27, %v3442_v26 }
  0xe3   :  { %v660_v47 = vpop.f32.mrf.mxu2  ;;  %v673_v48 = vpop.f32.mrf.mxu3  ;;  %1588 = vmatpush.bf16.msrb.mxu0 %v3043_v50  ;;  %v3490_v50 = vld [vmem:[#allocation5 + $0x388] sm:$0xf]  ;;  %v4153_v34 = vld [vmem:[#allocation5 + $0x10c] sm:$0xf]  ;;  %v3476_v9 = vld [vmem:[#allocation5 + $0x378] sm:$0xf0] }
  0xe4   :  { %v661_v51 = vadd.f32 %v660_v47, %v4609_v49  ;;  %v636_v53 = vpop.f32.mrf.mxu0  ;;  %v649_v28 = vpop.f32.mrf.mxu1  ;;  %v4632_v55 = vpack.c.bf16 %v693_v46, %v693_v46  ;;  %1599 = vmatpush.bf16.msrb.mxu1 %v3203_v40  ;;  %v4181_v49 = vld [vmem:[#allocation5 + $0x1ec] sm:$0xf]  ;;  %v4199_v40 = vld [vmem:[#allocation5 + $0x274] sm:$0xf0]  ;;  %v3236_v46 = vld [vmem:[#allocation5 + $0x198] sm:$0xf0] }
  0xe5   :  { %v3287_v14 = vor.u32 %v4181_v49, %v3284_v12  ;;  %v3347_v47 = vor.u32 %v4199_v40, %v3346_v39  ;;  %v4195_v53 = vld [vmem:[#allocation5 + $0x254] sm:$0xf0]  ;;  %v4129_v28 = vld [vmem:[#allocation5 + $0x4c] sm:$0xf]  ;;  %v3540_v40 = vld [vmem:[#allocation5 + $0x3f8] sm:$0xf0] }
  0xe6   :  { %v674_v60 = vadd.f32 %v673_v48, %v661_v51  ;;  %1511 = vmatmul.bf16.vlgmr.msrb.gmra.mxu2 %v4632_v55  ;;  %1589 = vmatmul.bf16.vlgmr.msrb.gmra.mxu0 %v4620_v45  ;;  %v3095_v48 = vor.u32 %v4133_v41, %v3092_v42  ;;  %v4235_v51 = vld [vmem:[#allocation5 + $0x394] sm:$0xf0]  ;;  %v4125_v12 = vld [vmem:[#allocation5 + $0x2c] sm:$0xf]  ;;  %v3428_v27 = vld [vmem:[#allocation5 + $0x318] sm:$0xf0] }
  0xe7   :  { %1607 = vmatpush.bf16.msrb.mxu2 %v3411_v4  ;;  %1633 = vmatpush.bf16.msra.mxu0 %v3159_v8  ;;  %v3076_v4 = vld [vmem:[#allocation5 + $0x58] sm:$0xf0]  ;;  %v3239_v8 = vor.u32 %v4169_v44, %v3236_v46  ;;  %v3491_v54 = vor.u32 %v4235_v51, %v3490_v50  ;;  %v4191_v49 = vld [vmem:[#allocation5 + $0x234] sm:$0xf0]  ;;  %v4245_v39 = vld [vmem:[#allocation5 + $0x3ec] sm:$0xf] }
  0xe8   :  { %v690_v0 = vadd.f32 %v682_v52, %v674_v60  ;;  %1600 = vmatpush.bf16.msrb.mxu1 %v3187_v56  ;;  %v3330_v52 = vld [vmem:[#allocation5 + $0x248] sm:$0xf]  ;;  %v4165_v56 = vld [vmem:[#allocation5 + $0x16c] sm:$0xf]  ;;  %v3079_v59 = vor.u32 %v4129_v28, %v3076_v4  ;;  %v3315_v6 = vor.u32 %v4191_v49, %v3314_v63  ;;  %v3543_v44 = vor.u32 %v4245_v39, %v3540_v40  ;;  %v3364_v51 = vld [vmem:[#allocation5 + $0x298] sm:$0xf0] }
  0xe9   :  { %v3331_v58 = vor.u32 %v4195_v53, %v3330_v52  ;;  %v3474_v60 = vld [vmem:[#allocation5 + $0x368] sm:$0xf]  ;;  %v4205_v42 = vld [vmem:[#allocation5 + $0x2ac] sm:$0xf]  ;;  %v3658_v52 = vld [vmem:[#allocation7 + $0xe0] sm:$0xf] }
  0xea   :  { %v694_v13 = vmax.f32 %v690_v0, 0.0  ;;  %v3060_v0 = vld [vmem:[#allocation5 + $0x38] sm:$0xf0]  ;;  %v4201_v50 = vld [vmem:[#allocation5 + $0x28c] sm:$0xf] }
  0xeb   :  { %v662_v15 = vpop.f32.mrf.mxu2  ;;  %v675_v16 = vpop.f32.mrf.mxu3  ;;  %1608 = vmatpush.bf16.msrb.mxu2 %v3395_v1  ;;  %1634 = vmatpush.bf16.msra.mxu0 %v3143_v2  ;;  %v3223_v1 = vor.u32 %v4165_v56, %v3220_v57  ;;  %v3475_v2 = vor.u32 %v4231_v62, %v3474_v60  ;;  %v4278_v53 = vld [vmem:[#allocation7 + $0xec] sm:$0xf0]  ;;  %v3642_v28 = vld [vmem:[#allocation7 + $0xc0] sm:$0xf]  ;;  %v4237_v56 = vld [vmem:[#allocation5 + $0x3ac] sm:$0xf] }
  0xec   :  { %v4636_v21 = vpack.c.bf16 %v694_v13, %v694_v13  ;;  %1601 = vmatpush.bf16.msrb.mxu1 %v3171_v7  ;;  %v3063_v7 = vor.u32 %v4125_v12, %v3060_v0  ;;  %v4187_v13 = vld [vmem:[#allocation5 + $0x214] sm:$0xf0]  ;;  %v3044_v15 = vld [vmem:[#allocation5 + $0x18] sm:$0xf0]  ;;  %v3207_v16 = vor.u32 %v4161_v3, %v3204_v5  ;;  %v3626_v62 = vld [vmem:[#allocation7 + $0xa0] sm:$0xf] }
  0xed   :  { %v3299_v24 = vor.u32 %v4187_v13, %v3298_v11  ;;  %v3508_v57 = vld [vmem:[#allocation5 + $0x3b8] sm:$0xf0]  ;;  %v4270_v63 = vld [vmem:[#allocation7 + $0xac] sm:$0xf0]  ;;  %v4233_v0 = vld [vmem:[#allocation5 + $0x38c] sm:$0xf] }
  0xee   :  { %1524 = vmatmul.bf16.vlgmr.msrb.gmra.mxu3 %v4636_v21  ;;  %v3511_v49 = vor.u32 %v4237_v56, %v3508_v57  ;;  %v3627_v3 = vor.u32 %v4270_v63, %v3626_v62  ;;  %v3316_v11 = vld [vmem:[#allocation5 + $0x238] sm:$0xf0]  ;;  %v4217_v26 = vld [vmem:[#allocation5 + $0x30c] sm:$0xf]  ;;  %v3578_v39 = vld [vmem:[#allocation7 + $0x40] sm:$0xf] }
  0xef   :  { %1620 = vmatpush.bf16.msrb.mxu3 %v3539_v17  ;;  %1609 = vmatpush.bf16.msrb.mxu2 %v3379_v22  ;;  %v4213_v17 = vld [vmem:[#allocation5 + $0x2ec] sm:$0xf]  ;;  %v4258_v40 = vld [vmem:[#allocation7 + $0x4c] sm:$0xf0]  ;;  %v3722_v56 = vld [vmem:[#allocation7 + $0x160] sm:$0xf] }
  0xf0   :  { %1646 = vmatpush.bf16.msra.mxu1 %v3287_v14  ;;  %1635 = vmatpush.bf16.msra.mxu0 %v3127_v23  ;;  %v4121_v14 = vld [vmem:[#allocation5 + $0xc] sm:$0xf]  ;;  %v3188_v23 = vld [vmem:[#allocation5 + $0x138] sm:$0xf0]  ;;  %v3415_v29 = vor.u32 %v4213_v17, %v3412_v19  ;;  %v4294_v57 = vld [vmem:[#allocation7 + $0x16c] sm:$0xf0] }
  0xf1   :  { %1602 = vmatmul.bf16.vlgmr.msrb.gmra.mxu1 %v4623_v61  ;;  %v4157_v22 = vld [vmem:[#allocation5 + $0x12c] sm:$0xf]  ;;  %v3047_v25 = vor.u32 %v4121_v14, %v3044_v15  ;;  %v3319_v14 = vor.u32 %v4189_v10, %v3316_v11  ;;  %v3300_v19 = vld [vmem:[#allocation5 + $0x218] sm:$0xf0]  ;;  %v4272_v62 = vld [vmem:[#allocation7 + $0xc4] sm:$0xf] }
  0xf2   :  { %v3191_v30 = vor.u32 %v4157_v22, %v3188_v23  ;;  %v4225_v15 = vld [vmem:[#allocation5 + $0x34c] sm:$0xf]  ;;  %v3644_v63 = vld [vmem:[#allocation7 + $0xd0] sm:$0xf0]  ;;  %v3690_v10 = vld [vmem:[#allocation7 + $0x120] sm:$0xf] }
  0xf3   :  { %1621 = vmatpush.bf16.msrb.mxu3 %v3523_v32  ;;  %1610 = vmatpush.bf16.msrb.mxu2 %v3363_v35  ;;  %v3396_v32 = vld [vmem:[#allocation5 + $0x2d8] sm:$0xf0]  ;;  %v4185_v17 = vld [vmem:[#allocation5 + $0x20c] sm:$0xf]  ;;  %v4286_v11 = vld [vmem:[#allocation7 + $0x12c] sm:$0xf0] }
  0xf4   :  { %1647 = vmatpush.bf16.msra.mxu1 %v3271_v31  ;;  %1636 = vmatpush.bf16.msra.mxu0 %v3111_v18  ;;  %v4209_v31 = vld [vmem:[#allocation5 + $0x2cc] sm:$0xf]  ;;  %v3172_v35 = vld [vmem:[#allocation5 + $0x118] sm:$0xf0]  ;;  %v3426_v18 = vld [vmem:[#allocation5 + $0x308] sm:$0xf]  ;;  %v3303_v22 = vor.u32 %v4185_v17, %v3300_v19 }
  0xf5   :  { %v3399_v38 = vor.u32 %v4209_v31, %v3396_v32  ;;  %v3175_v41 = vor.u32 %v4153_v34, %v3172_v35  ;;  %v4221_v23 = vld [vmem:[#allocation5 + $0x32c] sm:$0xf]  ;;  %v4266_v31 = vld [vmem:[#allocation7 + $0x8c] sm:$0xf0]  ;;  %v3786_v35 = vld [vmem:[#allocation7 + $0x1e0] sm:$0xf] }
  0xf6   :  { %1563 = vmatmul.bf16.vlgmr.msra.gmra.mxu2 %v4632_v55  ;;  %v4262_v34 = vld [vmem:[#allocation7 + $0x6c] sm:$0xf0]  ;;  %v3612_v17 = vld [vmem:[#allocation7 + $0x90] sm:$0xf0] }
  0xf7   :  { %1622 = vmatpush.bf16.msrb.mxu3 %v3507_v43  ;;  %1611 = vmatpush.bf16.msrb.mxu2 %v3347_v47  ;;  %v3427_v43 = vor.u32 %v4219_v36, %v3426_v18  ;;  %v4241_v47 = vld [vmem:[#allocation5 + $0x3cc] sm:$0xf]  ;;  %v4310_v36 = vld [vmem:[#allocation7 + $0x1ec] sm:$0xf0] }
  0xf8   :  { %1648 = vmatpush.bf16.msra.mxu1 %v3255_v37  ;;  %1637 = vmatpush.bf16.msra.mxu0 %v3095_v48  ;;  %v3380_v37 = vld [vmem:[#allocation5 + $0x2b8] sm:$0xf0] }
  0xf9   :  { %v3383_v46 = vor.u32 %v4205_v42, %v3380_v37  ;;  %v3524_v48 = vld [vmem:[#allocation5 + $0x3d8] sm:$0xf0]  ;;  %v4306_v42 = vld [vmem:[#allocation7 + $0x1cc] sm:$0xf0] }
  0xfa   :  { %v3527_v4 = vor.u32 %v4241_v47, %v3524_v48  ;;  %v4302_v47 = vld [vmem:[#allocation7 + $0x1ac] sm:$0xf0] }
  0xfb   :  { %1623 = vmatpush.bf16.msrb.mxu3 %v3491_v54  ;;  %1612 = vmatpush.bf16.msrb.mxu2 %v3331_v58  ;;  %v4274_v54 = vld [vmem:[#allocation7 + $0xcc] sm:$0xf0]  ;;  %v4197_v58 = vld [vmem:[#allocation5 + $0x26c] sm:$0xf] }
  0xfc   :  { %1649 = vmatpush.bf16.msra.mxu1 %v3239_v8  ;;  %1638 = vmatpush.bf16.msra.mxu0 %v3079_v59  ;;  %v3659_v8 = vor.u32 %v4278_v53, %v3658_v52  ;;  %v3348_v59 = vld [vmem:[#allocation5 + $0x278] sm:$0xf0]  ;;  %v3643_v60 = vor.u32 %v4274_v54, %v3642_v28  ;;  %v3738_v52 = vld [vmem:[#allocation7 + $0x180] sm:$0xf]  ;;  %v4298_v28 = vld [vmem:[#allocation7 + $0x18c] sm:$0xf0] }
  0xfd   :  { %v3351_v12 = vor.u32 %v4197_v58, %v3348_v59  ;;  %v3739_v54 = vor.u32 %v4298_v28, %v3738_v52  ;;  %v3914_v58 = vld [vmem:[#allocation7 + $0x2e0] sm:$0xf]  ;;  %v3723_v59 = vor.u32 %v4294_v57, %v3722_v56  ;;  %v4248_v56 = vld [vmem:[#allocation7 + $0x4] sm:$0xf]  ;;  %v3548_v57 = vld [vmem:[#allocation7 + $0x10] sm:$0xf0] }
  0xfe   :  { %1576 = vmatmul.bf16.vlgmr.msra.gmra.mxu3 %v4636_v21 }
  0xff   :  { %1624 = vmatpush.bf16.msrb.mxu3 %v3475_v2  ;;  %1613 = vmatpush.bf16.msrb.mxu2 %v3315_v6  ;;  %v4193_v2 = vld [vmem:[#allocation5 + $0x24c] sm:$0xf] }
 0x100   :  { %1650 = vmatpush.bf16.msra.mxu1 %v3223_v1  ;;  %1639 = vmatpush.bf16.msra.mxu0 %v3063_v7  ;;  %v3492_v1 = vld [vmem:[#allocation5 + $0x398] sm:$0xf0]  ;;  %v4229_v7 = vld [vmem:[#allocation5 + $0x36c] sm:$0xf] }
 0x101   :  { %v3495_v5 = vor.u32 %v4233_v0, %v3492_v1  ;;  %v3479_v13 = vor.u32 %v4229_v7, %v3476_v9  ;;  %v3706_v0 = vld [vmem:[#allocation7 + $0x140] sm:$0xf]  ;;  %v4290_v1 = vld [vmem:[#allocation7 + $0x14c] sm:$0xf0] }
 0x103   :  { %1625 = vmatpush.bf16.msrb.mxu3 %v3459_v20  ;;  %1614 = vmatpush.bf16.msrb.mxu2 %v3299_v24  ;;  %v3444_v24 = vld [vmem:[#allocation5 + $0x338] sm:$0xf0] }
 0x104   :  { %1651 = vmatpush.bf16.msra.mxu1 %v3207_v16  ;;  %1640 = vmatpush.bf16.msra.mxu0 %v3047_v25  ;;  %v3460_v16 = vld [vmem:[#allocation5 + $0x358] sm:$0xf0]  ;;  %v3447_v25 = vor.u32 %v4221_v23, %v3444_v24  ;;  %v3674_v23 = vld [vmem:[#allocation7 + $0x100] sm:$0xf]  ;;  %v4282_v24 = vld [vmem:[#allocation7 + $0x10c] sm:$0xf0] }
 0x105   :  { %v3463_v20 = vor.u32 %v4225_v15, %v3460_v16  ;;  %v4334_v15 = vld [vmem:[#allocation7 + $0x2ac] sm:$0xf0]  ;;  %v4264_v16 = vld [vmem:[#allocation7 + $0x84] sm:$0xf] }
 0x106   :  { %1615 = vmatmul.bf16.vlgmr.msrb.gmra.mxu2 %v4632_v55 }
 0x107   :  { %1659 = vmatpush.bf16.msra.mxu2 %v3415_v29  ;;  %1626 = vmatpush.bf16.msrb.mxu3 %v3443_v33  ;;  %v3431_v29 = vor.u32 %v4217_v26, %v3428_v27  ;;  %v3594_v33 = vld [vmem:[#allocation7 + $0x60] sm:$0xf]  ;;  %v3675_v26 = vor.u32 %v4282_v24, %v3674_v23  ;;  %v4330_v27 = vld [vmem:[#allocation7 + $0x28c] sm:$0xf0]  ;;  %v3900_v23 = vld [vmem:[#allocation7 + $0x2d0] sm:$0xf0] }
 0x108   :  { %1652 = vmatpush.bf16.msra.mxu1 %v3191_v30  ;;  %1641 = vmatmul.bf16.vlgmr.msra.gmra.mxu0 %v4620_v45  ;;  %v3367_v45 = vor.u32 %v4201_v50, %v3364_v51  ;;  %v3610_v30 = vld [vmem:[#allocation7 + $0x80] sm:$0xf]  ;;  %v3595_v18 = vor.u32 %v4262_v34, %v3594_v33  ;;  %v4250_v51 = vld [vmem:[#allocation7 + $0xc] sm:$0xf0]  ;;  %v4308_v33 = vld [vmem:[#allocation7 + $0x1e4] sm:$0xf] }
 0x109   :  { %2471 = vmatpush.bf16.msrb.mxu0 %v3659_v8  ;;  %v3611_v32 = vor.u32 %v4266_v31, %v3610_v30  ;;  %v3546_v50 = vld [vmem:[#allocation7] sm:$0xf]  ;;  %v3660_v8 = vld [vmem:[#allocation7 + $0xf0] sm:$0xf0] }
 0x10a   :  { %v3547_v53 = vor.u32 %v4250_v51, %v3546_v50  ;;  %v3596_v30 = vld [vmem:[#allocation7 + $0x70] sm:$0xf0]  ;;  %v4300_v51 = vld [vmem:[#allocation7 + $0x1a4] sm:$0xf] }
 0x10b   :  { %1660 = vmatpush.bf16.msra.mxu2 %v3399_v38  ;;  %1627 = vmatpush.bf16.msrb.mxu3 %v3427_v43  ;;  %v3787_v38 = vor.u32 %v4310_v36, %v3786_v35  ;;  %v3562_v43 = vld [vmem:[#allocation7 + $0x20] sm:$0xf]  ;;  %v3788_v34 = vld [vmem:[#allocation7 + $0x1f0] sm:$0xf0]  ;;  %v4326_v36 = vld [vmem:[#allocation7 + $0x26c] sm:$0xf0] }
 0x10c   :  { %1653 = vmatpush.bf16.msra.mxu1 %v3175_v41  ;;  %v3770_v41 = vld [vmem:[#allocation7 + $0x1c0] sm:$0xf]  ;;  %v3791_v35 = vor.u32 %v4308_v33, %v3788_v34  ;;  %v3564_v50 = vld [vmem:[#allocation7 + $0x30] sm:$0xf0] }
 0x10d   :  { %2472 = vmatpush.bf16.msrb.mxu0 %v3643_v60  ;;  %v3771_v37 = vor.u32 %v4306_v42, %v3770_v41  ;;  %v4342_v60 = vld [vmem:[#allocation7 + $0x2ec] sm:$0xf0]  ;;  %v3580_v41 = vld [vmem:[#allocation7 + $0x50] sm:$0xf0] }
 0x10e   :  { %1628 = vmatmul.bf16.vlgmr.msrb.gmra.mxu3 %v4636_v21  ;;  %v3884_v34 = vld [vmem:[#allocation7 + $0x2b0] sm:$0xf0] }
 0x10f   :  { %1672 = vmatpush.bf16.msra.mxu3 %v3543_v44  ;;  %1654 = vmatmul.bf16.vlgmr.msra.gmra.mxu1 %v4623_v61  ;;  %v3332_v61 = vld [vmem:[#allocation5 + $0x258] sm:$0xf0]  ;;  %v4254_v44 = vld [vmem:[#allocation7 + $0x2c] sm:$0xf0] }
 0x110   :  { %1661 = vmatpush.bf16.msra.mxu2 %v3383_v46  ;;  %v3335_v6 = vor.u32 %v4193_v2, %v3332_v61  ;;  %2484 = vmatpush.bf16.msrb.mxu1 %v3787_v38  ;;  %v3563_v46 = vor.u32 %v4254_v44, %v3562_v43  ;;  %v3898_v2 = vld [vmem:[#allocation7 + $0x2c0] sm:$0xf]  ;;  %v3707_v61 = vor.u32 %v4290_v1, %v3706_v0 }
 0x111   :  { %2473 = vmatpush.bf16.msrb.mxu0 %v3627_v3  ;;  %v4338_v3 = vld [vmem:[#allocation7 + $0x2cc] sm:$0xf0]  ;;  %v4042_v0 = vld [vmem:[#allocation7 + $0x3e0] sm:$0xf] }
 0x112   :  { %v3899_v7 = vor.u32 %v4338_v3, %v3898_v2  ;;  %v4374_v2 = vld [vmem:[#allocation7 + $0x3ec] sm:$0xf0]  ;;  %v3724_v3 = vld [vmem:[#allocation7 + $0x170] sm:$0xf0] }
 0x113   :  { %1673 = vmatpush.bf16.msra.mxu3 %v3527_v4  ;;  %v4276_v4 = vld [vmem:[#allocation7 + $0xe4] sm:$0xf] }
 0x114   :  { %1662 = vmatpush.bf16.msra.mxu2 %v3367_v45  ;;  %2485 = vmatpush.bf16.msrb.mxu1 %v3771_v37  ;;  %v3663_v45 = vor.u32 %v4276_v4, %v3660_v8  ;;  %v3772_v37 = vld [vmem:[#allocation7 + $0x1d0] sm:$0xf0]  ;;  %v3818_v4 = vld [vmem:[#allocation7 + $0x220] sm:$0xf]  ;;  %v4318_v8 = vld [vmem:[#allocation7 + $0x22c] sm:$0xf0] }
 0x115   :  { %2474 = vmatpush.bf16.msrb.mxu0 %v3611_v32 }
 0x117   :  { %1674 = vmatpush.bf16.msra.mxu3 %v3511_v49  ;;  %v3915_v49 = vor.u32 %v4342_v60, %v3914_v58  ;;  %v4296_v58 = vld [vmem:[#allocation7 + $0x184] sm:$0xf]  ;;  %v3740_v60 = vld [vmem:[#allocation7 + $0x190] sm:$0xf0] }
 0x118   :  { %1663 = vmatpush.bf16.msra.mxu2 %v3351_v12  ;;  %v3647_v12 = vor.u32 %v4272_v62, %v3644_v63  ;;  %v3743_v63 = vor.u32 %v4296_v58, %v3740_v60  ;;  %v3836_v58 = vld [vmem:[#allocation7 + $0x250] sm:$0xf0] }
 0x119   :  { %2475 = vmatpush.bf16.msrb.mxu0 %v3595_v18  ;;  %v3850_v18 = vld [vmem:[#allocation7 + $0x260] sm:$0xf] }
 0x11b   :  { %1675 = vmatpush.bf16.msra.mxu3 %v3495_v5  ;;  %v4268_v5 = vld [vmem:[#allocation7 + $0xa4] sm:$0xf] }
 0x11c   :  { %1664 = vmatpush.bf16.msra.mxu2 %v3335_v6  ;;  %v3628_v6 = vld [vmem:[#allocation7 + $0xb0] sm:$0xf0] }
 0x11d   :  { %v3631_v9 = vor.u32 %v4268_v5, %v3628_v6  ;;  %v4043_v5 = vor.u32 %v4374_v2, %v4042_v0  ;;  %v3946_v0 = vld [vmem:[#allocation7 + $0x320] sm:$0xf] }
 0x11f   :  { %1676 = vmatpush.bf16.msra.mxu3 %v3479_v13  ;;  %v3882_v13 = vld [vmem:[#allocation7 + $0x2a0] sm:$0xf] }
 0x120   :  { %1665 = vmatpush.bf16.msra.mxu2 %v3319_v14  ;;  %v3691_v14 = vor.u32 %v4286_v11, %v3690_v10  ;;  %v3883_v19 = vor.u32 %v4334_v15, %v3882_v13  ;;  %v4026_v11 = vld [vmem:[#allocation7 + $0x3c0] sm:$0xf]  ;;  %v4370_v13 = vld [vmem:[#allocation7 + $0x3cc] sm:$0xf0] }
 0x121   :  { %v4027_v15 = vor.u32 %v4370_v13, %v4026_v11  ;;  %v4346_v13 = vld [vmem:[#allocation7 + $0x30c] sm:$0xf0] }
 0x123   :  { %1677 = vmatpush.bf16.msra.mxu3 %v3463_v20  ;;  %v3615_v20 = vor.u32 %v4264_v16, %v3612_v17  ;;  %v4288_v16 = vld [vmem:[#allocation7 + $0x144] sm:$0xf]  ;;  %v3708_v17 = vld [vmem:[#allocation7 + $0x150] sm:$0xf0] }
 0x124   :  { %1666 = vmatpush.bf16.msra.mxu2 %v3303_v22 }
 0x127   :  { %1678 = vmatpush.bf16.msra.mxu3 %v3447_v25  ;;  %1667 = vmatmul.bf16.vlgmr.msra.gmra.mxu2 %v4632_v55  ;;  %v3579_v55 = vor.u32 %v4258_v40, %v3578_v39  ;;  %v3866_v25 = vld [vmem:[#allocation7 + $0x280] sm:$0xf]  ;;  %v3851_v39 = vor.u32 %v4326_v36, %v3850_v18  ;;  %v4256_v40 = vld [vmem:[#allocation7 + $0x44] sm:$0xf] }
 0x128   :  { %2497 = vmatpush.bf16.msrb.mxu2 %v3915_v49  ;;  %v3867_v31 = vor.u32 %v4330_v27, %v3866_v25  ;;  %v3583_v42 = vor.u32 %v4256_v40, %v3580_v41  ;;  %v3802_v49 = vld [vmem:[#allocation7 + $0x200] sm:$0xf]  ;;  %v4366_v27 = vld [vmem:[#allocation7 + $0x3ac] sm:$0xf0] }
 0x129   :  { %2476 = vmatpush.bf16.msrb.mxu0 %v3579_v55  ;;  %v4304_v55 = vld [vmem:[#allocation7 + $0x1c4] sm:$0xf]  ;;  %v4659_v18 = vld [vmem:[%s4717_s6] sm:$0xf] }
 0x12a   :  { %v3775_v44 = vor.u32 %v4304_v55, %v3772_v37  ;;  %v3994_v36 = vld [vmem:[#allocation7 + $0x380] sm:$0xf]  ;;  %v4280_v55 = vld [vmem:[#allocation7 + $0x104] sm:$0xf] }
 0x12b   :  { %1679 = vmatpush.bf16.msra.mxu3 %v3431_v29  ;;  %v4260_v29 = vld [vmem:[#allocation7 + $0x64] sm:$0xf] }
 0x12c   :  { %2498 = vmatpush.bf16.msrb.mxu2 %v3899_v7  ;;  %v3599_v32 = vor.u32 %v4260_v29, %v3596_v30  ;;  %v4340_v7 = vld [vmem:[#allocation7 + $0x2e4] sm:$0xf] }
 0x12d   :  { %2477 = vmatpush.bf16.msrb.mxu0 %v3563_v46  ;;  %v4322_v46 = vld [vmem:[#allocation7 + $0x24c] sm:$0xf0]  ;;  %v4284_v30 = vld [vmem:[#allocation7 + $0x124] sm:$0xf] }
 0x12e   :  { %1680 = vmatmul.bf16.vlgmr.msra.gmra.mxu3 %v4636_v21  ;;  %v3754_v21 = vld [vmem:[#allocation7 + $0x1a0] sm:$0xf]  ;;  %v4328_v37 = vld [vmem:[#allocation7 + $0x284] sm:$0xf] }
 0x12f   :  { %v3755_v48 = vor.u32 %v4302_v47, %v3754_v21  ;;  %v3834_v21 = vld [vmem:[#allocation7 + $0x240] sm:$0xf]  ;;  %2510 = vmatpush.bf16.msrb.mxu3 %v4043_v5 }
 0x130   :  { %2499 = vmatpush.bf16.msrb.mxu2 %v3883_v19  ;;  %v3835_v47 = vor.u32 %v4322_v46, %v3834_v21  ;;  %v4336_v19 = vld [vmem:[#allocation7 + $0x2c4] sm:$0xf] }
 0x131   :  { %2486 = vmatpush.bf16.msrb.mxu1 %v3755_v48  ;;  %2478 = vmatpush.bf16.msrb.mxu0 %v3547_v53  ;;  %v4252_v48 = vld [vmem:[#allocation7 + $0x24] sm:$0xf]  ;;  %v3756_v53 = vld [vmem:[#allocation7 + $0x1b0] sm:$0xf0]  ;;  %v3903_v25 = vor.u32 %v4336_v19, %v3900_v23 }
 0x132   :  { %v3567_v52 = vor.u32 %v4252_v48, %v3564_v50  ;;  %v3759_v28 = vor.u32 %v4300_v51, %v3756_v53  ;;  %v3978_v48 = vld [vmem:[#allocation7 + $0x360] sm:$0xf]  ;;  %v4358_v50 = vld [vmem:[#allocation7 + $0x36c] sm:$0xf0]  ;;  %v3852_v53 = vld [vmem:[#allocation7 + $0x270] sm:$0xf0] }
 0x133   :  { %2511 = vmatpush.bf16.msrb.mxu3 %v4027_v15  ;;  %v3979_v51 = vor.u32 %v4358_v50, %v3978_v48  ;;  %v3804_v19 = vld [vmem:[#allocation7 + $0x210] sm:$0xf0] }
 0x134   :  { %2500 = vmatpush.bf16.msrb.mxu2 %v3867_v31  ;;  %v3692_v31 = vld [vmem:[#allocation7 + $0x130] sm:$0xf0] }
 0x135   :  { %2487 = vmatpush.bf16.msrb.mxu1 %v3739_v54  ;;  %2523 = vmatpush.bf16.msra.mxu0 %v3663_v45  ;;  %v3819_v45 = vor.u32 %v4318_v8, %v3818_v4  ;;  %v3695_v33 = vor.u32 %v4284_v30, %v3692_v31  ;;  %v830_v31 = vperm.slane %v4659_v18, 1 }
 0x138   :  { %2501 = vmatpush.bf16.msrb.mxu2 %v3851_v39  ;;  %v4362_v39 = vld [vmem:[#allocation7 + $0x38c] sm:$0xf0] }
 0x139   :  { %2488 = vmatpush.bf16.msrb.mxu1 %v3723_v59  ;;  %2524 = vmatpush.bf16.msra.mxu0 %v3647_v12  ;;  %v3551_v59 = vor.u32 %v4248_v56, %v3548_v57  ;;  %v4314_v12 = vld [vmem:[#allocation7 + $0x20c] sm:$0xf0]  ;;  %v3995_v41 = vor.u32 %v4362_v39, %v3994_v36  ;;  %v4320_v57 = vld [vmem:[#allocation7 + $0x244] sm:$0xf]  ;;  %v4271_v36 = vld [vmem:[#allocation7 + $0xb4] sm:$0xf0] }
 0x13a   :  { %v3803_v1 = vor.u32 %v4314_v12, %v3802_v49  ;;  %v4368_v39 = vld [vmem:[#allocation7 + $0x3c4] sm:$0xf] }
 0x13c   :  { %2502 = vmatpush.bf16.msrb.mxu2 %v3835_v47  ;;  %v829_v47 = vperm.slane %v4659_v18, 0 }
 0x13d   :  { %2489 = vmatpush.bf16.msrb.mxu1 %v3707_v61  ;;  %2525 = vmatpush.bf16.msra.mxu0 %v3631_v9  ;;  %v4292_v61 = vld [vmem:[#allocation7 + $0x164] sm:$0xf]  ;;  %v3916_v9 = vld [vmem:[#allocation7 + $0x2f0] sm:$0xf0] }
 0x13e   :  { %v3727_v6 = vor.u32 %v4292_v61, %v3724_v3  ;;  %v3919_v10 = vor.u32 %v4340_v7, %v3916_v9  ;;  %v4316_v61 = vld [vmem:[#allocation7 + $0x224] sm:$0xf]  ;;  %v3820_v3 = vld [vmem:[#allocation7 + $0x230] sm:$0xf0]  ;;  %v3666_v7 = vld [vmem:[#allocation7 + $0xe8] sm:$0xf] }
 0x13f   :  { %v4279_v9 = vld [vmem:[#allocation7 + $0xf4] sm:$0xf0] }
 0x140   :  { %2503 = vmatpush.bf16.msrb.mxu2 %v3819_v45  ;;  %v4354_v45 = vld [vmem:[#allocation7 + $0x34c] sm:$0xf0]  ;;  %v3667_v15 = vor.u32 %v4279_v9, %v3666_v7 }
 0x141   :  { %2490 = vmatpush.bf16.msrb.mxu1 %v3691_v14  ;;  %2526 = vmatpush.bf16.msra.mxu0 %v3615_v20  ;;  %v3711_v20 = vor.u32 %v4288_v16, %v3708_v17  ;;  %v4312_v17 = vld [vmem:[#allocation7 + $0x204] sm:$0xf] }
 0x143   :  { %v4648_v22 = vpop.f32.mrf.mxu0 }
 0x144   :  { %2504 = vmatpush.bf16.msrb.mxu2 %v3803_v1  ;;  %v1487_v8 = vadd.f32 %v4648_v22, %v829_v47  ;;  %v4350_v1 = vld [vmem:[#allocation7 + $0x32c] sm:$0xf0]  ;;  %v4012_v47 = vld [vmem:[#allocation7 + $0x3b0] sm:$0xf0] }
 0x145   :  { %2491 = vmatpush.bf16.msrb.mxu1 %v3675_v26  ;;  %2527 = vmatpush.bf16.msra.mxu0 %v3599_v32  ;;  %v4010_v26 = vld [vmem:[#allocation7 + $0x3a0] sm:$0xf]  ;;  %v4332_v32 = vld [vmem:[#allocation7 + $0x2a4] sm:$0xf]  ;;  %v3947_v22 = vor.u32 %v4350_v1, %v3946_v0  ;;  %v3778_v0 = vld [vmem:[#allocation7 + $0x1c8] sm:$0xf] }
 0x146   :  { %v4011_v29 = vor.u32 %v4366_v27, %v4010_v26  ;;  %v4275_v26 = vld [vmem:[#allocation7 + $0xd4] sm:$0xf0]  ;;  %v3807_v27 = vor.u32 %v4312_v17, %v3804_v19  ;;  %v3964_v17 = vld [vmem:[#allocation7 + $0x350] sm:$0xf0] }
 0x148   :  { %2549 = vmatpush.bf16.msra.mxu2 %v3919_v10  ;;  %2512 = vmatpush.bf16.msrb.mxu3 %v4011_v29  ;;  %v3823_v10 = vor.u32 %v4316_v61, %v3820_v3  ;;  %v4044_v29 = vld [vmem:[#allocation7 + $0x3f0] sm:$0xf0] }
 0x149   :  { %2536 = vmatpush.bf16.msra.mxu1 %v3791_v35  ;;  %2528 = vmatpush.bf16.msra.mxu0 %v3583_v42  ;;  %v3887_v35 = vor.u32 %v4332_v32, %v3884_v34  ;;  %v3676_v42 = vld [vmem:[#allocation7 + $0x110] sm:$0xf0]  ;;  %v3634_v34 = vld [vmem:[#allocation7 + $0xa8] sm:$0xf] }
 0x14a   :  { %v3980_v61 = vld [vmem:[#allocation7 + $0x370] sm:$0xf0] }
 0x14b   :  { %v1488_v43 = vpop.f32.mrf.mxu0 }
 0x14c   :  { %v4650_v38 = vpop.f32.mrf.mxu1  ;;  %2550 = vmatpush.bf16.msra.mxu2 %v3903_v25  ;;  %v3679_v43 = vor.u32 %v4280_v55, %v3676_v42  ;;  %2513 = vmatpush.bf16.msrb.mxu3 %v3995_v41  ;;  %v3650_v25 = vld [vmem:[#allocation7 + $0xc8] sm:$0xf]  ;;  %v3635_v42 = vor.u32 %v4271_v36, %v3634_v34  ;;  %v4348_v34 = vld [vmem:[#allocation7 + $0x324] sm:$0xf]  ;;  %v4277_v36 = vld [vmem:[#allocation7 + $0xec] sm:$0xf] }
 0x14d   :  { %2537 = vmatpush.bf16.msra.mxu1 %v3775_v44  ;;  %2529 = vmatpush.bf16.msra.mxu0 %v3567_v52  ;;  %v3868_v44 = vld [vmem:[#allocation7 + $0x290] sm:$0xf0]  ;;  %v4324_v52 = vld [vmem:[#allocation7 + $0x264] sm:$0xf] }
 0x14e   :  { %v3871_v46 = vor.u32 %v4328_v37, %v3868_v44  ;;  %v3855_v4 = vor.u32 %v4324_v52, %v3852_v53  ;;  %v3618_v37 = vld [vmem:[#allocation7 + $0x88] sm:$0xf]  ;;  %v4267_v44 = vld [vmem:[#allocation7 + $0x94] sm:$0xf0] }
 0x14f   :  { %v3619_v52 = vor.u32 %v4267_v44, %v3618_v37  ;;  %v3602_v53 = vld [vmem:[#allocation7 + $0x68] sm:$0xf] }
 0x150   :  { %2551 = vmatpush.bf16.msra.mxu2 %v3887_v35  ;;  %2514 = vmatpush.bf16.msrb.mxu3 %v3979_v51  ;;  %v3730_v37 = vld [vmem:[#allocation7 + $0x168] sm:$0xf] }
 0x151   :  { %2538 = vmatpush.bf16.msra.mxu1 %v3759_v28  ;;  %2530 = vmatpush.bf16.msra.mxu0 %v3551_v59  ;;  %v1500_v59 = vadd.f32 %v4650_v38, %v1487_v8  ;;  %v3930_v38 = vld [vmem:[#allocation7 + $0x300] sm:$0xf] }
 0x152   :  { %v3931_v16 = vor.u32 %v4346_v13, %v3930_v38  ;;  %v3762_v38 = vld [vmem:[#allocation7 + $0x1a8] sm:$0xf] }
 0x153   :  { %v4652_v62 = vpop.f32.mrf.mxu0 }
 0x154   :  { %v1501_v54 = vpop.f32.mrf.mxu1  ;;  %2552 = vmatpush.bf16.msra.mxu2 %v3871_v46  ;;  %v1539_v55 = vadd.f32 %v4652_v62, %v830_v31  ;;  %v4364_v46 = vld [vmem:[#allocation7 + $0x3a4] sm:$0xf]  ;;  %v4311_v62 = vld [vmem:[#allocation7 + $0x1f4] sm:$0xf0]  ;;  %v3746_v31 = vld [vmem:[#allocation7 + $0x188] sm:$0xf] }
 0x155   :  { %2539 = vmatpush.bf16.msra.mxu1 %v3743_v63  ;;  %v3962_v54 = vld [vmem:[#allocation7 + $0x340] sm:$0xf]  ;;  %v3839_v63 = vor.u32 %v4320_v57, %v3836_v58  ;;  %v4015_v48 = vor.u32 %v4364_v46, %v4012_v47 }
 0x156   :  { %v3963_v56 = vor.u32 %v4354_v45, %v3962_v54  ;;  %v4360_v45 = vld [vmem:[#allocation7 + $0x384] sm:$0xf] }
 0x158   :  { %2553 = vmatpush.bf16.msra.mxu2 %v3855_v4  ;;  %2515 = vmatpush.bf16.msrb.mxu3 %v3963_v56  ;;  %v3794_v4 = vld [vmem:[#allocation7 + $0x1e8] sm:$0xf]  ;;  %v3996_v56 = vld [vmem:[#allocation7 + $0x390] sm:$0xf0] }
 0x159   :  { %2540 = vmatpush.bf16.msra.mxu1 %v3727_v6  ;;  %v3999_v57 = vor.u32 %v4360_v45, %v3996_v56 }
 0x15b   :  { %v1540_v24 = vpop.f32.mrf.mxu0 }
 0x15c   :  { %v4654_v14 = vpop.f32.mrf.mxu1  ;;  %2554 = vmatpush.bf16.msra.mxu2 %v3839_v63  ;;  %2516 = vmatpush.bf16.msrb.mxu3 %v3947_v22  ;;  %v3795_v63 = vor.u32 %v4311_v62, %v3794_v4  ;;  %v4356_v22 = vld [vmem:[#allocation7 + $0x364] sm:$0xf] }
 0x15d   :  { %2541 = vmatpush.bf16.msra.mxu1 %v3711_v20  ;;  %v4372_v20 = vld [vmem:[#allocation7 + $0x3e4] sm:$0xf]  ;;  %v3983_v3 = vor.u32 %v4356_v22, %v3980_v61 }
 0x15e   :  { %v4047_v30 = vor.u32 %v4372_v20, %v4044_v29  ;;  %v3554_v29 = vld [vmem:[#allocation7 + $0x8] sm:$0xf] }
 0x160   :  { %2555 = vmatpush.bf16.msra.mxu2 %v3823_v10  ;;  %2517 = vmatpush.bf16.msrb.mxu3 %v3931_v16  ;;  %v3570_v10 = vld [vmem:[#allocation7 + $0x28] sm:$0xf]  ;;  %v4352_v16 = vld [vmem:[#allocation7 + $0x344] sm:$0xf] }
 0x161   :  { %2542 = vmatpush.bf16.msra.mxu1 %v3695_v33  ;;  %v3651_v33 = vor.u32 %v4275_v26, %v3650_v25  ;;  %v3967_v20 = vor.u32 %v4352_v16, %v3964_v17  ;;  %v3682_v16 = vld [vmem:[#allocation7 + $0x108] sm:$0xf]  ;;  %v4283_v17 = vld [vmem:[#allocation7 + $0x114] sm:$0xf0] }
 0x163   :  { %v4661_v21 = vpop.f32.mrf.mxu0 }
 0x164   :  { %v1553_v40 = vpop.f32.mrf.mxu1  ;;  %2556 = vmatpush.bf16.msra.mxu2 %v3807_v27  ;;  %2562 = vmatpush.bf16.msra.mxu3 %v4047_v30  ;;  %v4251_v30 = vld [vmem:[#allocation7 + $0x14] sm:$0xf0] }
 0x165   :  { %2543 = vmatpush.bf16.msra.mxu1 %v3679_v43  ;;  %v4028_v40 = vld [vmem:[#allocation7 + $0x3d0] sm:$0xf0]  ;;  %v1552_v43 = vadd.f32 %v4654_v14, %v1539_v55  ;;  %v3555_v55 = vor.u32 %v4251_v30, %v3554_v29  ;;  %v3683_v29 = vor.u32 %v4283_v17, %v3682_v16  ;;  %v4034_v16 = vld [vmem:[#allocation7 + $0x3c8] sm:$0xf]  ;;  %v4371_v17 = vld [vmem:[#allocation7 + $0x3d4] sm:$0xf0] }
 0x166   :  { %v4031_v41 = vor.u32 %v4368_v39, %v4028_v40  ;;  %v3668_v39 = vld [vmem:[#allocation7 + $0xf8] sm:$0xf0] }
 0x167   :  { %v3671_v47 = vor.u32 %v4277_v36, %v3668_v39  ;;  %v3588_v36 = vld [vmem:[#allocation7 + $0x58] sm:$0xf0]  ;;  %v4305_v39 = vld [vmem:[#allocation7 + $0x1cc] sm:$0xf] }
 0x168   :  { %2563 = vmatpush.bf16.msra.mxu3 %v4031_v41 }
 0x169   :  { %v1512_v28 = vpop.f32.mrf.mxu2 }
 0x16a   :  { %v1513_v12 = vadd.f32 %v1512_v28, %v1500_v59  ;;  %v4263_v28 = vld [vmem:[#allocation7 + $0x74] sm:$0xf0] }
 0x16b   :  { %v1592_v49 = vpop.f32.mrf.mxu0  ;;  %v3603_v59 = vor.u32 %v4263_v28, %v3602_v53  ;;  %v4273_v53 = vld [vmem:[#allocation7 + $0xcc] sm:$0xf]  ;;  %v3652_v28 = vld [vmem:[#allocation7 + $0xd8] sm:$0xf0] }
 0x16c   :  { %2564 = vmatpush.bf16.msra.mxu3 %v4015_v48  ;;  %v3586_v49 = vld [vmem:[#allocation7 + $0x48] sm:$0xf]  ;;  %v3655_v56 = vor.u32 %v4273_v53, %v3652_v28 }
 0x16d   :  { %v3922_v48 = vld [vmem:[#allocation7 + $0x2e8] sm:$0xf] }
 0x16e   :  { %v4666_v60 = vpop.f32.mrf.mxu1 }
 0x170   :  { %2565 = vmatpush.bf16.msra.mxu3 %v3999_v57  ;;  %v3714_v57 = vld [vmem:[#allocation7 + $0x148] sm:$0xf] }
 0x171   :  { %v1525_v2 = vpop.f32.mrf.mxu3  ;;  %v1514_v6 = vpop.f32.mrf.mxu2 }
 0x172   :  { %v1526_v5 = vadd.f32 %v1525_v2, %v1513_v12  ;;  %v4259_v12 = vld [vmem:[#allocation7 + $0x54] sm:$0xf0] }
 0x173   :  { %v4307_v2 = vld [vmem:[#allocation7 + $0x1d4] sm:$0xf0]  ;;  %v3587_v7 = vor.u32 %v4259_v12, %v3586_v49  ;;  %v4269_v49 = vld [vmem:[#allocation7 + $0xac] sm:$0xf]  ;;  %v3636_v12 = vld [vmem:[#allocation7 + $0xb8] sm:$0xf0] }
 0x174   :  { %v1685_v11 = vmax.f32 %v1526_v5, 0.0  ;;  %v831_v5 = vperm.slane %v4659_v18, 2  ;;  %v3779_v9 = vor.u32 %v4307_v2, %v3778_v0  ;;  %2566 = vmatpush.bf16.msra.mxu3 %v3983_v3  ;;  %v3639_v61 = vor.u32 %v4269_v49, %v3636_v12  ;;  %v3698_v3 = vld [vmem:[#allocation7 + $0x128] sm:$0xf]  ;;  %v4315_v49 = vld [vmem:[#allocation7 + $0x214] sm:$0xf0] }
 0x176   :  { %v4668_v23 = vpack.c.bf16 %v1685_v11, %v1685_v11  ;;  %v1605_v24 = vpop.f32.mrf.mxu1  ;;  %v4255_v11 = vld [vmem:[#allocation7 + $0x34] sm:$0xf0] }
 0x177   :  { %v1591_v24 = vadd.f32 %v4661_v21, %v831_v5  ;;  %v3571_v26 = vor.u32 %v4255_v11, %v3570_v10  ;;  %v4287_v5 = vld [vmem:[#allocation7 + $0x134] sm:$0xf0]  ;;  %v3620_v10 = vld [vmem:[#allocation7 + $0x98] sm:$0xf0] }
 0x178   :  { %2479 = vmatmul.bf16.vlgmr.msrb.gmra.mxu0 %v4668_v23  ;;  %2567 = vmatpush.bf16.msra.mxu3 %v3967_v20  ;;  %v3699_v11 = vor.u32 %v4287_v5, %v3698_v3  ;;  %v4331_v20 = vld [vmem:[#allocation7 + $0x294] sm:$0xf0]  ;;  %v3732_v3 = vld [vmem:[#allocation7 + $0x178] sm:$0xf0]  ;;  %v4341_v5 = vld [vmem:[#allocation7 + $0x2ec] sm:$0xf] }
 0x179   :  { %2575 = vmatpush.bf16.msrb.mxu0 %v3667_v15  ;;  %v1527_v32 = vpop.f32.mrf.mxu3  ;;  %v1564_v35 = vpop.f32.mrf.mxu2  ;;  %v4303_v15 = vld [vmem:[#allocation7 + $0x1b4] sm:$0xf0] }
 0x17a   :  { %v1565_v50 = vadd.f32 %v1564_v35, %v1552_v43  ;;  %v3763_v27 = vor.u32 %v4303_v15, %v3762_v38  ;;  %v1604_v32 = vadd.f32 %v4666_v60, %v1591_v24  ;;  %v3948_v35 = vld [vmem:[#allocation7 + $0x330] sm:$0xf0]  ;;  %v4295_v43 = vld [vmem:[#allocation7 + $0x174] sm:$0xf0]  ;;  %v4344_v60 = vld [vmem:[#allocation7 + $0x304] sm:$0xf] }
 0x17b   :  { %v3951_v40 = vor.u32 %v4348_v34, %v3948_v35  ;;  %v4261_v24 = vld [vmem:[#allocation7 + $0x6c] sm:$0xf]  ;;  %v4327_v34 = vld [vmem:[#allocation7 + $0x274] sm:$0xf0] }
 0x17c   :  { %v4257_v35 = vld [vmem:[#allocation7 + $0x4c] sm:$0xf] }
 0x17d   :  { %2576 = vmatpush.bf16.msrb.mxu0 %v3651_v33  ;;  %v4299_v33 = vld [vmem:[#allocation7 + $0x194] sm:$0xf0]  ;;  %2568 = vmatpush.bf16.msra.mxu3 %v3951_v40  ;;  %v3780_v40 = vld [vmem:[#allocation7 + $0x1d8] sm:$0xf0] }
 0x181   :  { %2577 = vmatpush.bf16.msrb.mxu0 %v3635_v42  ;;  %v1577_v51 = vpop.f32.mrf.mxu3  ;;  %v1566_v54 = vpop.f32.mrf.mxu2  ;;  %v3747_v42 = vor.u32 %v4299_v33, %v3746_v31 }
 0x182   :  { %v1578_v8 = vadd.f32 %v1577_v51, %v1565_v50  ;;  %v3932_v50 = vld [vmem:[#allocation7 + $0x310] sm:$0xf0]  ;;  %v3731_v54 = vor.u32 %v4295_v43, %v3730_v37  ;;  %v3783_v43 = vor.u32 %v4305_v39, %v3780_v40 }
 0x183   :  { %v3935_v4 = vor.u32 %v4344_v60, %v3932_v50  ;;  %v3764_v60 = vld [vmem:[#allocation7 + $0x1b8] sm:$0xf0] }
 0x184   :  { %v1686_v14 = vmax.f32 %v1578_v8, 0.0 }
 0x185   :  { %v4674_v58 = vpop.f32.mrf.mxu0  ;;  %2578 = vmatpush.bf16.msrb.mxu0 %v3619_v52  ;;  %v4343_v52 = vld [vmem:[#allocation7 + $0x2f4] sm:$0xf0]  ;;  %2569 = vmatpush.bf16.msra.mxu3 %v3935_v4 }
 0x186   :  { %v4676_v1 = vpack.c.bf16 %v1686_v14, %v1686_v14  ;;  %v3923_v45 = vor.u32 %v4343_v52, %v3922_v48  ;;  %v4291_v14 = vld [vmem:[#allocation7 + $0x154] sm:$0xf0]  ;;  %v4301_v48 = vld [vmem:[#allocation7 + $0x1ac] sm:$0xf]  ;;  %v3826_v52 = vld [vmem:[#allocation7 + $0x228] sm:$0xf] }
 0x187   :  { %v3715_v2 = vor.u32 %v4291_v14, %v3714_v57  ;;  %v3767_v28 = vor.u32 %v4301_v48, %v3764_v60  ;;  %v4319_v4 = vld [vmem:[#allocation7 + $0x234] sm:$0xf0]  ;;  %v3986_v48 = vld [vmem:[#allocation7 + $0x368] sm:$0xf] }
 0x188   :  { %2492 = vmatmul.bf16.vlgmr.msrb.gmra.mxu1 %v4676_v1  ;;  %2531 = vmatmul.bf16.vlgmr.msra.gmra.mxu0 %v4668_v23  ;;  %v4359_v60 = vld [vmem:[#allocation7 + $0x374] sm:$0xf0] }
 0x189   :  { %2579 = vmatpush.bf16.msrb.mxu0 %v3603_v59  ;;  %2588 = vmatpush.bf16.msrb.mxu1 %v3795_v63  ;;  %v1579_v6 = vpop.f32.mrf.mxu3  ;;  %v1616_v19 = vpop.f32.mrf.mxu2  ;;  %v3906_v59 = vld [vmem:[#allocation7 + $0x2c8] sm:$0xf]  ;;  %v4339_v63 = vld [vmem:[#allocation7 + $0x2d4] sm:$0xf0] }
 0x18a   :  { %v1617_v41 = vadd.f32 %v1616_v19, %v1604_v32  ;;  %v3907_v22 = vor.u32 %v4339_v63, %v3906_v59  ;;  %v3890_v6 = vld [vmem:[#allocation7 + $0x2a8] sm:$0xf]  ;;  %v3827_v59 = vor.u32 %v4319_v4, %v3826_v52  ;;  %v4321_v4 = vld [vmem:[#allocation7 + $0x24c] sm:$0xf] }
 0x18b   :  { %v3874_v19 = vld [vmem:[#allocation7 + $0x288] sm:$0xf] }
 0x18c   :  { %v4681_v13 = vpop.f32.mrf.mxu1  ;;  %v3875_v30 = vor.u32 %v4331_v20, %v3874_v19  ;;  %v3858_v32 = vld [vmem:[#allocation7 + $0x268] sm:$0xf]  ;;  %v4289_v19 = vld [vmem:[#allocation7 + $0x14c] sm:$0xf]  ;;  %v3716_v20 = vld [vmem:[#allocation7 + $0x158] sm:$0xf0] }
 0x18d   :  { %v1644_v25 = vpop.f32.mrf.mxu0  ;;  %2580 = vmatpush.bf16.msrb.mxu0 %v3587_v7  ;;  %2589 = vmatpush.bf16.msrb.mxu1 %v3779_v9  ;;  %v4335_v7 = vld [vmem:[#allocation7 + $0x2b4] sm:$0xf0]  ;;  %v4265_v9 = vld [vmem:[#allocation7 + $0x8c] sm:$0xf]  ;;  %v3810_v63 = vld [vmem:[#allocation7 + $0x208] sm:$0xf] }
 0x18e   :  { %v3891_v38 = vor.u32 %v4335_v7, %v3890_v6  ;;  %v3623_v15 = vor.u32 %v4265_v9, %v3620_v10  ;;  %v3604_v25 = vld [vmem:[#allocation7 + $0x78] sm:$0xf0]  ;;  %v3811_v9 = vor.u32 %v4315_v49, %v3810_v63  ;;  %v3938_v49 = vld [vmem:[#allocation7 + $0x308] sm:$0xf] }
 0x18f   :  { %v3607_v31 = vor.u32 %v4261_v24, %v3604_v25  ;;  %v3924_v6 = vld [vmem:[#allocation7 + $0x2f8] sm:$0xf0]  ;;  %v4337_v24 = vld [vmem:[#allocation7 + $0x2cc] sm:$0xf] }
 0x190   :  { %v3908_v25 = vld [vmem:[#allocation7 + $0x2d8] sm:$0xf0] }
 0x191   :  { %2581 = vmatpush.bf16.msrb.mxu0 %v3571_v26  ;;  %2590 = vmatpush.bf16.msrb.mxu1 %v3763_v27  ;;  %v1629_v21 = vpop.f32.mrf.mxu3  ;;  %v1618_v51 = vpop.f32.mrf.mxu2  ;;  %v4309_v26 = vld [vmem:[#allocation7 + $0x1ec] sm:$0xf]  ;;  %v3796_v27 = vld [vmem:[#allocation7 + $0x1f8] sm:$0xf0] }
 0x192   :  { %v1630_v44 = vadd.f32 %v1629_v21, %v1617_v41  ;;  %v3799_v33 = vor.u32 %v4309_v26, %v3796_v27  ;;  %v832_v41 = vperm.slane %v4659_v18, 3  ;;  %v3859_v21 = vor.u32 %v4327_v34, %v3858_v32  ;;  %v4367_v32 = vld [vmem:[#allocation7 + $0x3b4] sm:$0xf0]  ;;  %v3700_v34 = vld [vmem:[#allocation7 + $0x138] sm:$0xf0] }
 0x193   :  { %v4035_v27 = vor.u32 %v4371_v17, %v4034_v16  ;;  %v4004_v16 = vld [vmem:[#allocation7 + $0x398] sm:$0xf0] }
 0x194   :  { %v1657_v46 = vpop.f32.mrf.mxu1  ;;  %v1687_v8 = vmax.f32 %v1630_v44, 0.0  ;;  %v4323_v44 = vld [vmem:[#allocation7 + $0x254] sm:$0xf0]  ;;  %v1643_v18 = vadd.f32 %v4674_v58, %v832_v41  ;;  %v4002_v41 = vld [vmem:[#allocation7 + $0x388] sm:$0xf] }
 0x195   :  { %2582 = vmatpush.bf16.msrb.mxu0 %v3555_v55  ;;  %2591 = vmatpush.bf16.msrb.mxu1 %v3747_v42  ;;  %v3591_v55 = vor.u32 %v4257_v35, %v3588_v36  ;;  %v3842_v42 = vld [vmem:[#allocation7 + $0x248] sm:$0xf]  ;;  %v4253_v46 = vld [vmem:[#allocation7 + $0x2c] sm:$0xf]  ;;  %v3892_v36 = vld [vmem:[#allocation7 + $0x2b8] sm:$0xf0] }
 0x196   :  { %v4685_v62 = vpack.c.bf16 %v1687_v8, %v1687_v8  ;;  %v3843_v50 = vor.u32 %v4323_v44, %v3842_v42  ;;  %v1656_v53 = vadd.f32 %v4681_v13, %v1643_v18  ;;  %v4249_v8 = vld [vmem:[#allocation7 + $0xc] sm:$0xf]  ;;  %v4050_v13 = vld [vmem:[#allocation7 + $0x3e8] sm:$0xf]  ;;  %v3684_v42 = vld [vmem:[#allocation7 + $0x118] sm:$0xf0] }
 0x197   :  { %v4333_v35 = vld [vmem:[#allocation7 + $0x2ac] sm:$0xf] }
 0x198   :  { %2505 = vmatmul.bf16.vlgmr.msrb.gmra.mxu2 %v4685_v62  ;;  %2544 = vmatmul.bf16.vlgmr.msra.gmra.mxu1 %v4676_v1  ;;  %v3895_v40 = vor.u32 %v4333_v35, %v3892_v36  ;;  %v4325_v18 = vld [vmem:[#allocation7 + $0x26c] sm:$0xf] }
 0x199   :  { %2627 = vmatpush.bf16.msra.mxu0 %v3671_v47  ;;  %2592 = vmatpush.bf16.msrb.mxu1 %v3731_v54  ;;  %v1631_v0 = vpop.f32.mrf.mxu3  ;;  %v3572_v47 = vld [vmem:[#allocation7 + $0x38] sm:$0xf0] }
 0x19a   :  { %2583 = vmatmul.bf16.vlgmr.msrb.gmra.mxu0 %v4668_v23  ;;  %2601 = vmatpush.bf16.msrb.mxu2 %v3923_v45  ;;  %v3575_v51 = vor.u32 %v4253_v46, %v3572_v47  ;;  %v3556_v54 = vld [vmem:[#allocation7 + $0x18] sm:$0xf0]  ;;  %v4297_v45 = vld [vmem:[#allocation7 + $0x18c] sm:$0xf] }
 0x19b   :  { %v3559_v58 = vor.u32 %v4249_v8, %v3556_v54  ;;  %v3844_v8 = vld [vmem:[#allocation7 + $0x258] sm:$0xf0] }
 0x19d   :  { %2628 = vmatpush.bf16.msra.mxu0 %v3655_v56  ;;  %2593 = vmatpush.bf16.msrb.mxu1 %v3715_v2  ;;  %v3748_v56 = vld [vmem:[#allocation7 + $0x198] sm:$0xf0] }
 0x19e   :  { %2602 = vmatpush.bf16.msrb.mxu2 %v3907_v22  ;;  %v3751_v2 = vor.u32 %v4297_v45, %v3748_v56  ;;  %v4375_v22 = vld [vmem:[#allocation7 + $0x3f4] sm:$0xf0]  ;;  %v3847_v45 = vor.u32 %v4321_v4, %v3844_v8  ;;  %v3954_v56 = vld [vmem:[#allocation7 + $0x328] sm:$0xf] }
 0x19f   :  { %v4051_v10 = vor.u32 %v4375_v22, %v4050_v13  ;;  %v4373_v13 = vld [vmem:[#allocation7 + $0x3ec] sm:$0xf]  ;;  %v4052_v22 = vld [vmem:[#allocation7 + $0x3f8] sm:$0xf0] }
 0x1a1   :  { %2629 = vmatpush.bf16.msra.mxu0 %v3639_v61  ;;  %2594 = vmatpush.bf16.msrb.mxu1 %v3699_v11  ;;  %v4293_v61 = vld [vmem:[#allocation7 + $0x16c] sm:$0xf] }
 0x1a2   :  { %2603 = vmatpush.bf16.msrb.mxu2 %v3891_v38  ;;  %v3735_v38 = vor.u32 %v4293_v61, %v3732_v3  ;;  %v4055_v3 = vor.u32 %v4373_v13, %v4052_v22 }
 0x1a5   :  { %2630 = vmatpush.bf16.msra.mxu0 %v3623_v15  ;;  %2595 = vmatpush.bf16.msrb.mxu1 %v3683_v29  ;;  %v3927_v15 = vor.u32 %v4341_v5, %v3924_v6  ;;  %v3719_v29 = vor.u32 %v4289_v19, %v3716_v20  ;;  %v4369_v5 = vld [vmem:[#allocation7 + $0x3cc] sm:$0xf]  ;;  %v4036_v6 = vld [vmem:[#allocation7 + $0x3d8] sm:$0xf0] }
 0x1a6   :  { %2604 = vmatpush.bf16.msrb.mxu2 %v3875_v30  ;;  %v3911_v30 = vor.u32 %v4337_v24, %v3908_v25  ;;  %v4357_v19 = vld [vmem:[#allocation7 + $0x36c] sm:$0xf]  ;;  %v3988_v20 = vld [vmem:[#allocation7 + $0x378] sm:$0xf0] }
 0x1a7   :  { %v3991_v24 = vor.u32 %v4357_v19, %v3988_v20  ;;  %v4353_v25 = vld [vmem:[#allocation7 + $0x34c] sm:$0xf] }
 0x1a8   :  { %2557 = vmatmul.bf16.vlgmr.msra.gmra.mxu2 %v4685_v62  ;;  %2596 = vmatmul.bf16.vlgmr.msrb.gmra.mxu1 %v4676_v1 }
 0x1a9   :  { %2631 = vmatpush.bf16.msra.mxu0 %v3607_v31  ;;  %2640 = vmatpush.bf16.msra.mxu1 %v3799_v33  ;;  %v4018_v31 = vld [vmem:[#allocation7 + $0x3a8] sm:$0xf]  ;;  %v4285_v33 = vld [vmem:[#allocation7 + $0x12c] sm:$0xf] }
 0x1aa   :  { %v1668_v37 = vpop.f32.mrf.mxu2  ;;  %2605 = vmatpush.bf16.msrb.mxu2 %v3859_v21  ;;  %v4019_v39 = vor.u32 %v4367_v32, %v4018_v31  ;;  %v4363_v21 = vld [vmem:[#allocation7 + $0x394] sm:$0xf0]  ;;  %v4345_v32 = vld [vmem:[#allocation7 + $0x30c] sm:$0xf] }
 0x1ab   :  { %v1669_v57 = vadd.f32 %v1668_v37, %v1656_v53  ;;  %v4329_v37 = vld [vmem:[#allocation7 + $0x28c] sm:$0xf]  ;;  %v4003_v44 = vor.u32 %v4363_v21, %v4002_v41  ;;  %v3970_v53 = vld [vmem:[#allocation7 + $0x348] sm:$0xf] }
 0x1ad   :  { %2632 = vmatpush.bf16.msra.mxu0 %v3591_v55  ;;  %2641 = vmatpush.bf16.msra.mxu1 %v3783_v43  ;;  %v4281_v55 = vld [vmem:[#allocation7 + $0x10c] sm:$0xf]  ;;  %v3876_v43 = vld [vmem:[#allocation7 + $0x298] sm:$0xf0] }
 0x1ae   :  { %2606 = vmatpush.bf16.msrb.mxu2 %v3843_v50  ;;  %v3687_v46 = vor.u32 %v4281_v55, %v3684_v42  ;;  %v3879_v47 = vor.u32 %v4329_v37, %v3876_v43  ;;  %v3860_v50 = vld [vmem:[#allocation7 + $0x278] sm:$0xf0] }
 0x1af   :  { %v3863_v52 = vor.u32 %v4325_v18, %v3860_v50 }
 0x1b1   :  { %v1681_v14 = vpop.f32.mrf.mxu3  ;;  %2633 = vmatpush.bf16.msra.mxu0 %v3575_v51  ;;  %2642 = vmatpush.bf16.msra.mxu1 %v3767_v28  ;;  %v3987_v51 = vor.u32 %v4359_v60, %v3986_v48  ;;  %v4355_v28 = vld [vmem:[#allocation7 + $0x354] sm:$0xf0] }
 0x1b2   :  { %v1682_v12 = vadd.f32 %v1681_v14, %v1669_v57  ;;  %v1670_v0 = vpop.f32.mrf.mxu2  ;;  %2607 = vmatpush.bf16.msrb.mxu2 %v3827_v59  ;;  %v3971_v54 = vor.u32 %v4355_v28, %v3970_v53  ;;  %v4351_v57 = vld [vmem:[#allocation7 + $0x334] sm:$0xf0]  ;;  %v4317_v14 = vld [vmem:[#allocation7 + $0x22c] sm:$0xf]  ;;  %v3828_v59 = vld [vmem:[#allocation7 + $0x238] sm:$0xf0] }
 0x1b3   :  { %v3831_v63 = vor.u32 %v4317_v14, %v3828_v59  ;;  %v4313_v0 = vld [vmem:[#allocation7 + $0x20c] sm:$0xf] }
 0x1b4   :  { %v1688_v7 = vmax.f32 %v1682_v12, 0.0  ;;  %v4347_v12 = vld [vmem:[#allocation7 + $0x314] sm:$0xf0] }
 0x1b5   :  { %2634 = vmatpush.bf16.msra.mxu0 %v3559_v58  ;;  %2643 = vmatpush.bf16.msra.mxu1 %v3751_v2  ;;  %v3955_v58 = vor.u32 %v4351_v57, %v3954_v56  ;;  %v3812_v2 = vld [vmem:[#allocation7 + $0x218] sm:$0xf0]  ;;  %v3939_v61 = vor.u32 %v4347_v12, %v3938_v49 }
 0x1b6   :  { %v4695_v11 = vpack.c.bf16 %v1688_v7, %v1688_v7  ;;  %2608 = vmatpush.bf16.msrb.mxu2 %v3811_v9  ;;  %v4039_v7 = vor.u32 %v4369_v5, %v4036_v6  ;;  %v4365_v9 = vld [vmem:[#allocation7 + $0x3ac] sm:$0xf] }
 0x1b8   :  { %2518 = vmatmul.bf16.vlgmr.msrb.gmra.mxu3 %v4695_v11  ;;  %2635 = vmatmul.bf16.vlgmr.msra.gmra.mxu0 %v4668_v23  ;;  %v3703_v23 = vor.u32 %v4285_v33, %v3700_v34 }
 0x1b9   :  { %2614 = vmatpush.bf16.msrb.mxu3 %v4051_v10  ;;  %v1683_v26 = vpop.f32.mrf.mxu3  ;;  %2644 = vmatpush.bf16.msra.mxu1 %v3735_v38  ;;  %v4020_v10 = vld [vmem:[#allocation7 + $0x3b8] sm:$0xf0] }
 0x1ba   :  { %2653 = vmatpush.bf16.msra.mxu2 %v3927_v15  ;;  %v4023_v38 = vor.u32 %v4365_v9, %v4020_v10  ;;  %v4361_v15 = vld [vmem:[#allocation7 + $0x38c] sm:$0xf]  ;;  %v3972_v26 = vld [vmem:[#allocation7 + $0x358] sm:$0xf0] }
 0x1bb   :  { %2609 = vmatmul.bf16.vlgmr.msrb.gmra.mxu2 %v4685_v62  ;;  %v4007_v17 = vor.u32 %v4361_v15, %v4004_v16  ;;  %v2684_v15 = vld [vmem:[#allocation8 + $0x8] sm:$0xff]  ;;  %v2683_v16 = vld [vmem:[#allocation8] sm:$0xff] }
 0x1bc   :  { %v2692_v19 = vunpack.c.h.b16 %v2683_v16 }
 0x1bd   :  { %2615 = vmatpush.bf16.msrb.mxu3 %v4035_v27  ;;  %2645 = vmatpush.bf16.msra.mxu1 %v3719_v29  ;;  %v3975_v27 = vor.u32 %v4353_v25, %v3972_v26  ;;  %v4349_v29 = vld [vmem:[#allocation7 + $0x32c] sm:$0xf] }
 0x1be   :  { %2654 = vmatpush.bf16.msra.mxu2 %v3911_v30  ;;  %v3956_v30 = vld [vmem:[#allocation7 + $0x338] sm:$0xf0]  ;;  %v2696_v26 = vpack.c.b16 %v2692_v19, %v2692_v19 }
 0x1bf   :  { %v3959_v31 = vor.u32 %v4349_v29, %v3956_v30 }
 0x1c1   :  { %2616 = vmatpush.bf16.msrb.mxu3 %v4019_v39  ;;  %2646 = vmatpush.bf16.msra.mxu1 %v3703_v23 }
 0x1c2   :  { %2655 = vmatpush.bf16.msra.mxu2 %v3895_v40 }
 0x1c5   :  { %2617 = vmatpush.bf16.msrb.mxu3 %v4003_v44  ;;  %2647 = vmatpush.bf16.msra.mxu1 %v3687_v46 }
 0x1c6   :  { %2656 = vmatpush.bf16.msra.mxu2 %v3879_v47  ;;  %v1821_v47 = vld [vmem:[%s4719_s8] sm:$0xf] }
 0x1c7   :  { %v1824_v56 = vperm.slane %v1821_v47, 1 }
 0x1c8   :  { %2570 = vmatmul.bf16.vlgmr.msra.gmra.mxu3 %v4695_v11  ;;  %2648 = vmatmul.bf16.vlgmr.msra.gmra.mxu1 %v4676_v1  ;;  %v3815_v1 = vor.u32 %v4313_v0, %v3812_v2 }
 0x1c9   :  { %2618 = vmatpush.bf16.msrb.mxu3 %v3987_v51 }
 0x1ca   :  { %2657 = vmatpush.bf16.msra.mxu2 %v3863_v52 }
 0x1cd   :  { %2619 = vmatpush.bf16.msrb.mxu3 %v3971_v54 }
 0x1ce   :  { %2658 = vmatpush.bf16.msra.mxu2 %v3847_v45 }
 0x1d1   :  { %2620 = vmatpush.bf16.msrb.mxu3 %v3955_v58 }
 0x1d2   :  { %2659 = vmatpush.bf16.msra.mxu2 %v3831_v63 }
 0x1d5   :  { %2621 = vmatpush.bf16.msrb.mxu3 %v3939_v61  ;;  %v1825_v61 = vperm.slane %v1821_v47, 2 }
 0x1d6   :  { %2660 = vmatpush.bf16.msra.mxu2 %v3815_v1 }
 0x1d8   :  { %2622 = vmatmul.bf16.vlgmr.msrb.gmra.mxu3 %v4695_v11 }
 0x1d9   :  { %2666 = vmatpush.bf16.msra.mxu3 %v4055_v3  ;;  %2661 = vmatmul.bf16.vlgmr.msra.gmra.mxu2 %v4685_v62  ;;  %v3940_v62 = vld [vmem:[#allocation7 + $0x318] sm:$0xf0] }
 0x1da   :  { %v3943_v33 = vor.u32 %v4345_v32, %v3940_v62  ;;  %v4492_v32 = vmov 0   ;;  %v1826_v62 = vperm.slane %v1821_v47, 3 }
 0x1db   :  { %4383 = vset.pattern.permute.xlu0 %v4492_v32 }
 0x1dd   :  { %2667 = vmatpush.bf16.msra.mxu3 %v4039_v7 }
 0x1e1   :  { %2668 = vmatpush.bf16.msra.mxu3 %v4023_v38 }
 0x1e5   :  { %2669 = vmatpush.bf16.msra.mxu3 %v4007_v17  ;;  %v2691_v17 = vunpack.c.l.b16 %v2683_v16 }
 0x1e7   :  { %v2695_v25 = vpack.c.b16 %v2691_v17, %v2691_v17 }
 0x1e9   :  { %2670 = vmatpush.bf16.msra.mxu3 %v3991_v24  ;;  %v2693_v24 = vunpack.c.l.b16 %v2684_v15 }
 0x1eb   :  { %v2697_v30 = vpack.c.b16 %v2693_v24, %v2693_v24 }
 0x1ed   :  { %2671 = vmatpush.bf16.msra.mxu3 %v3975_v27 }
 0x1f1   :  { %2672 = vmatpush.bf16.msra.mxu3 %v3959_v31  ;;  %v2755_v31 = vld [vmem:[#allocation2] sm:$0x1] }
 0x1f2   :  { %2758 = vperm.xlu0 %4383, %v2755_v31  }
 0x1f5   :  { %2673 = vmatpush.bf16.msra.mxu3 %v3943_v33  ;;  %v2480_v34 = vpop.f32.mrf.mxu0 }
 0x1f8   :  { %2674 = vmatmul.bf16.vlgmr.msra.gmra.mxu3 %v4695_v11  ;;  %v1823_v11 = vperm.slane %v1821_v47, 0 }
 0x1fa   :  { %v2481_v18 = vadd.f32 %v2480_v34, %v1823_v11 }
 0x1fd   :  { %v2482_v35 = vpop.f32.mrf.mxu0 }
 0x205   :  { %v2493_v36 = vpop.f32.mrf.mxu1  ;;  %v2532_v39 = vpop.f32.mrf.mxu0 }
 0x206   :  { %v2494_v51 = vadd.f32 %v2493_v36, %v2481_v18  ;;  %v2533_v14 = vadd.f32 %v2532_v39, %v1824_v56 }
 0x20d   :  { %v2495_v23 = vpop.f32.mrf.mxu1  ;;  %v2534_v40 = vpop.f32.mrf.mxu0 }
 0x215   :  { %v2545_v41 = vpop.f32.mrf.mxu1 }
 0x216   :  { %v2546_v63 = vadd.f32 %v2545_v41, %v2533_v14  ;;  %v2694_v41 = vunpack.c.h.b16 %v2684_v15 }
 0x217   :  { %v2584_v21 = vpop.f32.mrf.mxu0 }
 0x218   :  { %v2585_v3 = vadd.f32 %v2584_v21, %v1825_v61 }
 0x21b   :  { %v2506_v55 = vpop.f32.mrf.mxu2 }
 0x21c   :  { %v2507_v52 = vadd.f32 %v2506_v55, %v2494_v51  ;;  %v2698_v55 = vpack.c.b16 %v2694_v41, %v2694_v41 }
 0x21d   :  { %v2547_v42 = vpop.f32.mrf.mxu1 }
 0x21f   :  { %v2586_v37 = vpop.f32.mrf.mxu0 }
 0x223   :  { %v2508_v43 = vpop.f32.mrf.mxu2 }
 0x225   :  { %v2597_v44 = vpop.f32.mrf.mxu1 }
 0x226   :  { %v2598_v5 = vadd.f32 %v2597_v44, %v2585_v3 }
 0x22b   :  { %v2558_v46 = vpop.f32.mrf.mxu2 }
 0x22c   :  { %v2559_v49 = vadd.f32 %v2558_v46, %v2546_v63 }
 0x22d   :  { %v2599_v48 = vpop.f32.mrf.mxu1 }
 0x233   :  { %v2560_v50 = vpop.f32.mrf.mxu2 }
 0x235   :  { %v2636_v60 = vpop.f32.mrf.mxu0 }
 0x236   :  { %v2637_v33 = vadd.f32 %v2636_v60, %v1826_v62 }
 0x23b   :  { %v2519_v53 = vpop.f32.mrf.mxu3 }
 0x23c   :  { %v2520_v28 = vadd.f32 %v2519_v53, %v2507_v52 }
 0x23d   :  { %v2638_v4 = vpop.f32.mrf.mxu0 }
 0x23e   :  { %v2679_v8 = vmax.f32 %v2520_v28, 0.0  ;;  %v2610_v54 = vpop.f32.mrf.mxu2 }
 0x23f   :  { %v2611_v6 = vadd.f32 %v2610_v54, %v2598_v5 }
 0x240   :  { %v2685_v45 = vpack.c.bf16 %v2679_v8, %v2679_v8 }
 0x242   :  { %2710 = vmatpush.bf16.xpose.msrb.mxu0 %v2685_v45 }
 0x243   :  { %v2521_v57 = vpop.f32.mrf.mxu3 }
 0x245   :  { %v2649_v59 = vpop.f32.mrf.mxu1 }
 0x246   :  { %v2612_v58 = vpop.f32.mrf.mxu2  ;;  %v2650_v34 = vadd.f32 %v2649_v59, %v2637_v33 }
 0x249   :  { %2711 = vmatmul.bf16.vlgmr.msrb.gmra.mxu0 %v2695_v25 }
 0x24b   :  { %v2571_v12 = vpop.f32.mrf.mxu3 }
 0x24c   :  { %v2572_v0 = vadd.f32 %v2571_v12, %v2559_v49 }
 0x24d   :  { %v2651_v13 = vpop.f32.mrf.mxu1 }
 0x24e   :  { %v2680_v2 = vmax.f32 %v2572_v0, 0.0 }
 0x250   :  { %v2686_v22 = vpack.c.bf16 %v2680_v2, %v2680_v2 }
 0x252   :  { %2723 = vmatpush.bf16.xpose.msrb.mxu1 %v2686_v22 }
 0x253   :  { %v2573_v1 = vpop.f32.mrf.mxu3 }
 0x259   :  { %2724 = vmatmul.bf16.vlgmr.msrb.gmra.mxu1 %v2696_v26 }
 0x25b   :  { %v2623_v7 = vpop.f32.mrf.mxu3 }
 0x25c   :  { %v2624_v9 = vadd.f32 %v2623_v7, %v2611_v6  ;;  %v2662_v10 = vpop.f32.mrf.mxu2 }
 0x25d   :  { %v2663_v35 = vadd.f32 %v2662_v10, %v2650_v34 }
 0x25e   :  { %v2681_v38 = vmax.f32 %v2624_v9, 0.0 }
 0x260   :  { %v2687_v20 = vpack.c.bf16 %v2681_v38, %v2681_v38 }
 0x262   :  { %2736 = vmatpush.bf16.xpose.msrb.mxu2 %v2687_v20 }
 0x263   :  { %v2625_v27 = vpop.f32.mrf.mxu3 }
 0x264   :  { %v2664_v29 = vpop.f32.mrf.mxu2  ;;  %v2759_v47 = vpop.permute.xlu0 %2758 }
 0x265   :  { %v2761_v18 = vperm.slane %v2759_v47, 0 }
 0x269   :  { %2737 = vmatmul.bf16.vlgmr.msrb.gmra.mxu2 %v2697_v30 }
 0x27b   :  { %v2675_v36 = vpop.f32.mrf.mxu3 }
 0x27c   :  { %v2676_v39 = vadd.f32 %v2675_v36, %v2663_v35 }
 0x27e   :  { %v2682_v23 = vmax.f32 %v2676_v39, 0.0 }
 0x280   :  { %v2688_v40 = vpack.c.bf16 %v2682_v23, %v2682_v23 }
 0x282   :  { %2749 = vmatpush.bf16.xpose.msrb.mxu3 %v2688_v40 }
 0x283   :  { %v2677_v21 = vpop.f32.mrf.mxu3 }
 0x289   :  { %2750 = vmatmul.bf16.vlgmr.msrb.gmra.mxu3 %v2698_v55 }
 0x2c6   :  { %v2712_v42 = vpop.f32.mrf.mxu0 }
 0x2ce   :  { %v2714_v43 = vpop.f32.mrf.mxu0 }
 0x2d6   :  { %v2725_v37 = vpop.f32.mrf.mxu1 }
 0x2d7   :  { %v2726_v11 = vadd.f32 %v2725_v37, %v2712_v42 }
 0x2de   :  { %v2727_v44 = vpop.f32.mrf.mxu1 }
 0x2ec   :  { %v2738_v46 = vpop.f32.mrf.mxu2 }
 0x2ed   :  { %v2739_v60 = vadd.f32 %v2738_v46, %v2726_v11 }
 0x2f4   :  { %v2740_v48 = vpop.f32.mrf.mxu2 }
 0x30c   :  { %v2751_v50 = vpop.f32.mrf.mxu3 }
 0x30d   :  { %v2752_v51 = vadd.f32 %v2751_v50, %v2739_v60 }
 0x30f   :  { %v2762_v52 = vadd.f32 %v2761_v18, %v2752_v51 }
 0x311   :  { %2764 = vst.msk [vmem:[%s4722_s11] sm:$0x1] %vm2763_vm2, %v2762_v52 }
 0x314   :  { %v2753_v53 = vpop.f32.mrf.mxu3 }
 0x315   :  { %2769 = vsyncpa [#allocation4], 1 }
 0x316   :  { %2770 = vsyncpa [#allocation6], 1 }
 0x317   :  { %2771 = vsyncpa [#allocation9], 1 }

</bundles_post_ra>
